<compile_context>
chip_gen: v7x
topology: tpu7x:2x2x1
jax: 0.10.0
libtpu: 0.0.40
codegen_flags: <defaults>
</compile_context>

<pallas_src>
import jax
import jax.numpy as jnp
from jax import lax
from jax.experimental import pallas as pl
from jax.experimental.pallas import tpu as pltpu

LANE = 128


def _round_up(x, m):
    return (x + m - 1) // m * m


# ----------------------------------------------------------------------------
# Pallas kernel: weighted fusion + ReLU + 3x3 conv (im2col matmul) + BN bias
# ----------------------------------------------------------------------------
def _make_fused_kernel(H, W, Cp, Wp, n_in, bb):
    Hp = H + 2                    # padded rows per batch element
    Rtot = bb * Hp + 3            # scratch rows (incl. flat-shift spill rows)
    M = bb * Hp * Wp              # matmul rows (valid + discarded halo/pad)
    taps = tuple(dy * Wp + dx for dy in range(3) for dx in range(3))

    def kernel(*refs):
        fw_ref = refs[0]                 # SMEM (n_in,) fusion weights
        in_refs = refs[1:1 + n_in]       # VMEM (bb,H,W,Cp) f32 each
        w_ref = refs[1 + n_in]           # VMEM (9*Cp,Cp) bf16, BN scale folded
        b_ref = refs[2 + n_in]           # VMEM (1,Cp) f32 folded BN bias
        out_ref = refs[3 + n_in]         # VMEM (bb,H,W,Cp) f32
        pad_ref = refs[4 + n_in]         # VMEM scratch (Rtot,Wp,Cp) bf16

        # Weighted fusion + ReLU on the VPU, then bf16 operands for the MXU.
        x = fw_ref[0] * in_refs[0][...]
        for j in range(1, n_in):
            x = x + fw_ref[j] * in_refs[j][...]
        xb = jnp.maximum(x, 0.0).astype(jnp.bfloat16)       # (bb,H,W,Cp)

        # Re-zero ONLY the halo that feeds valid outputs (cheap; the interior
        # is fully overwritten every step):
        #   * column 0 and column W+1 (left / right conv padding),
        #   * per-batch top (row 0) and bottom (row H+1) padding rows,
        #   * the 3 flat-shift spill rows (hygiene / determinism only).
        # Columns W+2..Wp-1 only feed discarded outputs and are left as-is.
        zcol = jnp.zeros((Rtot, 1, Cp), jnp.bfloat16)
        pad_ref[:, 0:1, :] = zcol
        pad_ref[:, W + 1:W + 2, :] = zcol
        zrow = jnp.zeros((1, Wp, Cp), jnp.bfloat16)
        for b in range(bb):
            pad_ref[b * Hp:b * Hp + 1, :, :] = zrow
            pad_ref[b * Hp + H + 1:b * Hp + H + 2, :, :] = zrow
        pad_ref[bb * Hp:Rtot, :, :] = jnp.zeros((Rtot - bb * Hp, Wp, Cp),
                                                jnp.bfloat16)
        for b in range(bb):
            pad_ref[b * Hp + 1:b * Hp + 1 + H, 1:W + 1, :] = xb[b]

        # 3x3 conv as ONE im2col matmul (K = 9*Cp): the nine taps are pure
        # flat row-shifts of the padded buffer (no strided-view reshapes),
        # concatenated on the lane axis.  Accumulation lives in the MXU path.
        pf = pad_ref[...].reshape(Rtot * Wp, Cp)
        patch = jnp.concatenate([pf[o:o + M, :] for o in taps], axis=1)
        y = jnp.dot(patch, w_ref[...], preferred_element_type=jnp.float32)
        y = y + b_ref[...]                          # folded-BN bias only
        y = y.reshape(bb, Hp, Wp, Cp)[:, :H, :W, :]  # drop halo/pad outputs
        out_ref[...] = y.astype(out_ref.dtype)       # lane-dense (Cp=128) store

    return kernel


def fused_relu_conv_bn(maps, fuse_w, conv_w_flat, bias):
    """maps: list of [B,H,W,Cp] f32 (same shape, Cp = channels padded to 128);
    fuse_w: [len(maps)] f32; conv_w_flat: [9*Cp,Cp] bf16 (tap-major
    [k*Cp+cin, cout], BN scale folded in); bias: [Cp] f32 (folded BN bias)."""
    n_in = len(maps)
    B, H, W, Cp = maps[0].shape
    Wp = _round_up(W + 2, 16)      # sublane-aligned padded width (bf16 tiling)
    # Small levels: whole batch in one grid step (amortize per-step overhead);
    # larger levels: one batch element per (megacore-parallel) step.
    bb = B if B * H * W * Cp * 4 <= (4 << 20) else 1
    assert B % bb == 0
    Rtot = bb * (H + 2) + 3
    kernel = _make_fused_kernel(H, W, Cp, Wp, n_in, bb)

    map_spec = pl.BlockSpec((bb, H, W, Cp), lambda g: (g, 0, 0, 0))
    in_specs = [pl.BlockSpec(memory_space=pltpu.MemorySpace.SMEM)]
    in_specs += [map_spec] * n_in
    in_specs += [pl.BlockSpec((9 * Cp, Cp), lambda g: (0, 0)),
                 pl.BlockSpec((1, Cp), lambda g: (0, 0))]

    return pl.pallas_call(
        kernel,
        out_shape=jax.ShapeDtypeStruct((B, H, W, Cp), jnp.float32),
        grid=(B // bb,),
        in_specs=in_specs,
        out_specs=map_spec,
        scratch_shapes=[pltpu.VMEM((Rtot, Wp, Cp), jnp.bfloat16)],
        compiler_params=pltpu.CompilerParams(
            dimension_semantics=("parallel",)),   # batch is independent (v7x)
    )(fuse_w.astype(jnp.float32), *maps, conv_w_flat, bias.reshape(1, Cp))


# ----------------------------------------------------------------------------
# Plain-JAX glue: nearest resize, weight norm, BN folding, parameter init
# ----------------------------------------------------------------------------
def nearest_resize(x, out_h, out_w):
    # Matches F.interpolate(mode='nearest'): src_idx = floor(dst_idx * in/out).
    in_h, in_w = x.shape[1], x.shape[2]
    if out_h % in_h == 0 and out_w % in_w == 0:        # integer upsample
        return jnp.repeat(jnp.repeat(x, out_h // in_h, axis=1),
                          out_w // in_w, axis=2)
    if in_h % out_h == 0 and in_w % out_w == 0:        # integer downsample
        return x[:, ::in_h // out_h, ::in_w // out_w, :]
    hi = jnp.floor(jnp.arange(out_h) * (in_h / out_h)).astype(jnp.int32)
    wi = jnp.floor(jnp.arange(out_w) * (in_w / out_w)).astype(jnp.int32)
    return x[:, hi][:, :, wi]


def _norm_weights(w, eps):
    w = jnp.maximum(w, 0.0)
    return w / (jnp.sum(w, axis=1, keepdims=True) + eps)


def _prepare_conv_bn(conv_w, bn_scale, bn_bias, C, Cp):
    """Fold the BN scale into the conv weight, zero-pad channels to Cp and
    flatten tap-major to [9*Cp, Cp] bf16; return the padded f32 BN bias."""
    w = conv_w * bn_scale[None, None, :]          # fold per-c_out scale
    wp = jnp.zeros((9, Cp, Cp), jnp.float32).at[:, :C, :C].set(w)
    w_flat = wp.reshape(9 * Cp, Cp).astype(jnp.bfloat16)
    b = jnp.zeros((Cp,), jnp.float32).at[:C].set(bn_bias)
    return w_flat, b


def init_params(key, feat_size, num_maps):
    keys = jax.random.split(key, 2 * (num_maps - 1))
    td_conv, bu_conv = [], []
    for i in range(num_maps - 1):
        td_conv.append(0.1 * jax.random.normal(
            keys[2 * i], (9, feat_size, feat_size), jnp.float32))
        bu_conv.append(0.1 * jax.random.normal(
            keys[2 * i + 1], (9, feat_size, feat_size), jnp.float32))
    bn_eps = 1e-5  # BatchNorm2d default; eval mode with default running stats
    bn_scale = jnp.ones((feat_size,), jnp.float32) / jnp.sqrt(1.0 + bn_eps)
    bn_bias = jnp.zeros((feat_size,), jnp.float32)
    return {
        "td_conv": td_conv,
        "bu_conv": bu_conv,
        "td_weights": jnp.ones((num_maps - 1, 2), jnp.float32),
        "bu_weights": jnp.ones((num_maps - 1, 3), jnp.float32),
        "td_bn": [(bn_scale, bn_bias)] * (num_maps - 1),
        "bu_bn": [(bn_scale, bn_bias)] * (num_maps - 1),
    }


# ----------------------------------------------------------------------------
# BiFPNLayer forward (Pallas hot path) and a pure-JAX reference
# ----------------------------------------------------------------------------
def bifpn_layer_forward(in_maps_nchw, params, eps=1e-4,
                        block_fn=fused_relu_conv_bn):
    C = in_maps_nchw[0].shape[1]
    Cp = _round_up(C, LANE)
    # NCHW -> NHWC, pad channels once to the lane width (lane-dense layout).
    in_maps = []
    for m in in_maps_nchw:
        x = jnp.transpose(m, (0, 2, 3, 1)).astype(jnp.float32)
        in_maps.append(jnp.pad(x, ((0, 0), (0, 0), (0, 0), (0, Cp - C))))
    num_maps = len(in_maps)

    td_w = _norm_weights(params["td_weights"], eps)
    bu_w = _norm_weights(params["bu_weights"], eps)
    td_wb = [_prepare_conv_bn(params["td_conv"][i], *params["td_bn"][i], C, Cp)
             for i in range(num_maps - 1)]
    bu_wb = [_prepare_conv_bn(params["bu_conv"][i], *params["bu_bn"][i], C, Cp)
             for i in range(num_maps - 1)]

    td_maps = [in_maps[-1]]
    for i in range(num_maps - 2, -1, -1):
        H, W = in_maps[i].shape[1], in_maps[i].shape[2]
        up = nearest_resize(td_maps[0], H, W)
        td_maps.insert(0, block_fn([in_maps[i], up], td_w[i], *td_wb[i]))

    bu_maps = [td_maps[0]]
    for i in range(num_maps - 1):
        H, W = td_maps[i + 1].shape[1], td_maps[i + 1].shape[2]
        down = nearest_resize(bu_maps[-1], H, W)
        bu_maps.append(block_fn([in_maps[i + 1], td_maps[i + 1], down],
                                bu_w[i], *bu_wb[i]))

    # Drop channel padding, NHWC -> NCHW.
    return [jnp.transpose(m[..., :C], (0, 3, 1, 2)) for m in bu_maps]


def _ref_block(maps, fuse_w, conv_w_flat, bias):
    """Pure-JAX reference consuming the SAME prepared (BN-folded, channel
    padded, bf16) weights as the Pallas kernel."""
    Cp = maps[0].shape[-1]
    x = maps[0] * fuse_w[0]
    for j in range(1, len(maps)):
        x = x + maps[j] * fuse_w[j]
    x = jnp.maximum(x, 0.0).astype(jnp.bfloat16).astype(jnp.float32)
    w = conv_w_flat.astype(jnp.float32).reshape(3, 3, Cp, Cp)
    y = lax.conv_general_dilated(x, w, (1, 1), "SAME",
                                 dimension_numbers=("NHWC", "HWIO", "NHWC"),
                                 precision=lax.Precision.HIGHEST)
    return y + bias


# ----------------------------------------------------------------------------
# main
# ----------------------------------------------------------------------------
if __name__ == "__main__":
    key = jax.random.PRNGKey(0)
    feat_size, num_maps, batch = 8, 3, 2
    spatial = [16, 8, 4]  # decreasing pyramid resolutions

    k_params, k_in = jax.random.split(key)
    params = init_params(k_params, feat_size, num_maps)

    in_keys = jax.random.split(k_in, num_maps)
    in_maps = [jax.random.normal(in_keys[i],
                                 (batch, feat_size, spatial[i], spatial[i]),
                                 jnp.float32)
               for i in range(num_maps)]

    out_maps = bifpn_layer_forward(in_maps, params)
    out_maps = [jax.block_until_ready(m) for m in out_maps]

    ref_maps = bifpn_layer_forward(in_maps, params, block_fn=_ref_block)
    ref_maps = [jax.block_until_ready(m) for m in ref_maps]

    for o, r in zip(out_maps, ref_maps):
        assert o.shape == r.shape and o.dtype == r.dtype
        # bf16 MXU operands vs bf16-rounded f32 reference: loose tolerance.
        assert jnp.allclose(o, r, rtol=1e-2, atol=1e-2), "mismatch vs JAX reference"

    print("KERNEL_OK")
</pallas_src>

<mosaic_0001>
module attributes {stable_mosaic.version = 11 : i64} {
  func.func @kernel(%arg0: i32, %arg1: memref<2xf32, #tpu.memory_space<smem>>, %arg2: memref<2x8x8x128xf32, #tpu.memory_space<vmem>>, %arg3: memref<2x8x8x128xf32, #tpu.memory_space<vmem>>, %arg4: memref<1152x128xbf16, #tpu.memory_space<vmem>>, %arg5: memref<1x128xf32, #tpu.memory_space<vmem>>, %arg6: memref<2x8x8x128xf32, #tpu.memory_space<vmem>>, %arg7: memref<23x16x128xbf16, #tpu.memory_space<vmem>>) attributes {dimension_semantics = [#tpu.dimension_semantics<parallel>], iteration_bounds = array<i64: 1>, scalar_prefetch = 0 : i64, scratch_operands = 1 : i64, tpu.core_type = #tpu.core_type<tc>, window_params = [{transform_indices = @transform_0, window_bounds = array<i64: 2>}, {transform_indices = @transform_1, window_bounds = array<i64: 2, 8, 8, 128>}, {transform_indices = @transform_2, window_bounds = array<i64: 2, 8, 8, 128>}, {pipeline_mode = #tpu.pipeline_mode<synchronous>, transform_indices = @transform_3, window_bounds = array<i64: 1152, 128>}, {pipeline_mode = #tpu.pipeline_mode<synchronous>, transform_indices = @transform_4, window_bounds = array<i64: 1, 128>}, {transform_indices = @transform_5, window_bounds = array<i64: 2, 8, 8, 128>}]} {
    %c0 = arith.constant 0 : index
    %0 = memref.load %arg1[%c0] : memref<2xf32, #tpu.memory_space<smem>>
    %c0_0 = arith.constant 0 : index
    %c0_1 = arith.constant 0 : index
    %c0_2 = arith.constant 0 : index
    %c0_3 = arith.constant 0 : index
    %1 = vector.load %arg2[%c0_0, %c0_1, %c0_2, %c0_3] : memref<2x8x8x128xf32, #tpu.memory_space<vmem>>, vector<2x8x8x128xf32>
    %2 = vector.broadcast %0 : f32 to vector<2x8x8x128xf32>
    %3 = arith.mulf %2, %1 : vector<2x8x8x128xf32>
    %c1 = arith.constant 1 : index
    %4 = memref.load %arg1[%c1] : memref<2xf32, #tpu.memory_space<smem>>
    %c0_4 = arith.constant 0 : index
    %c0_5 = arith.constant 0 : index
    %c0_6 = arith.constant 0 : index
    %c0_7 = arith.constant 0 : index
    %5 = vector.load %arg3[%c0_4, %c0_5, %c0_6, %c0_7] : memref<2x8x8x128xf32, #tpu.memory_space<vmem>>, vector<2x8x8x128xf32>
    %6 = vector.broadcast %4 : f32 to vector<2x8x8x128xf32>
    %7 = arith.mulf %6, %5 : vector<2x8x8x128xf32>
    %8 = arith.addf %3, %7 : vector<2x8x8x128xf32>
    %cst = arith.constant 0.000000e+00 : f32
    %9 = vector.broadcast %cst : f32 to vector<2x8x8x128xf32>
    %10 = arith.maximumf %8, %9 : vector<2x8x8x128xf32>
    %11 = arith.truncf %10 : vector<2x8x8x128xf32> to vector<2x8x8x128xbf16>
    %cst_8 = arith.constant 0.000000e+00 : bf16
    %12 = vector.broadcast %cst_8 : bf16 to vector<23x1x128xbf16>
    %c0_9 = arith.constant 0 : index
    %c0_10 = arith.constant 0 : index
    %c0_11 = arith.constant 0 : index
    %13 = vector.load %arg7[%c0_9, %c0_10, %c0_11] : memref<23x16x128xbf16, #tpu.memory_space<vmem>>, vector<23x1x128xbf16>
    tpu.vector_store %arg7[%c0_9, %c0_10, %c0_11], %12 {strides = array<i32>} : memref<23x16x128xbf16, #tpu.memory_space<vmem>>, vector<23x1x128xbf16>,
    %c0_12 = arith.constant 0 : index
    %c9 = arith.constant 9 : index
    %c0_13 = arith.constant 0 : index
    %14 = vector.load %arg7[%c0_12, %c9, %c0_13] : memref<23x16x128xbf16, #tpu.memory_space<vmem>>, vector<23x1x128xbf16>
    tpu.vector_store %arg7[%c0_12, %c9, %c0_13], %12 {strides = array<i32>} : memref<23x16x128xbf16, #tpu.memory_space<vmem>>, vector<23x1x128xbf16>,
    %cst_14 = arith.constant 0.000000e+00 : bf16
    %15 = vector.broadcast %cst_14 : bf16 to vector<1x16x128xbf16>
    %c0_15 = arith.constant 0 : index
    %c0_16 = arith.constant 0 : index
    %c0_17 = arith.constant 0 : index
    %16 = vector.load %arg7[%c0_15, %c0_16, %c0_17] : memref<23x16x128xbf16, #tpu.memory_space<vmem>>, vector<1x16x128xbf16>
    tpu.vector_store %arg7[%c0_15, %c0_16, %c0_17], %15 {strides = array<i32>} : memref<23x16x128xbf16, #tpu.memory_space<vmem>>, vector<1x16x128xbf16>,
    %c9_18 = arith.constant 9 : index
    %c0_19 = arith.constant 0 : index
    %c0_20 = arith.constant 0 : index
    %17 = vector.load %arg7[%c9_18, %c0_19, %c0_20] : memref<23x16x128xbf16, #tpu.memory_space<vmem>>, vector<1x16x128xbf16>
    tpu.vector_store %arg7[%c9_18, %c0_19, %c0_20], %15 {strides = array<i32>} : memref<23x16x128xbf16, #tpu.memory_space<vmem>>, vector<1x16x128xbf16>,
    %c10 = arith.constant 10 : index
    %c0_21 = arith.constant 0 : index
    %c0_22 = arith.constant 0 : index
    %18 = vector.load %arg7[%c10, %c0_21, %c0_22] : memref<23x16x128xbf16, #tpu.memory_space<vmem>>, vector<1x16x128xbf16>
    tpu.vector_store %arg7[%c10, %c0_21, %c0_22], %15 {strides = array<i32>} : memref<23x16x128xbf16, #tpu.memory_space<vmem>>, vector<1x16x128xbf16>,
    %c19 = arith.constant 19 : index
    %c0_23 = arith.constant 0 : index
    %c0_24 = arith.constant 0 : index
    %19 = vector.load %arg7[%c19, %c0_23, %c0_24] : memref<23x16x128xbf16, #tpu.memory_space<vmem>>, vector<1x16x128xbf16>
    tpu.vector_store %arg7[%c19, %c0_23, %c0_24], %15 {strides = array<i32>} : memref<23x16x128xbf16, #tpu.memory_space<vmem>>, vector<1x16x128xbf16>,
    %cst_25 = arith.constant 0.000000e+00 : bf16
    %20 = vector.broadcast %cst_25 : bf16 to vector<3x16x128xbf16>
    %c20 = arith.constant 20 : index
    %c0_26 = arith.constant 0 : index
    %c0_27 = arith.constant 0 : index
    %21 = vector.load %arg7[%c20, %c0_26, %c0_27] : memref<23x16x128xbf16, #tpu.memory_space<vmem>>, vector<3x16x128xbf16>
    tpu.vector_store %arg7[%c20, %c0_26, %c0_27], %20 {strides = array<i32>} : memref<23x16x128xbf16, #tpu.memory_space<vmem>>, vector<3x16x128xbf16>,
    %22 = vector.extract_strided_slice %11 {offsets = [0, 0, 0, 0], sizes = [1, 8, 8, 128], strides = [1, 1, 1, 1]} : vector<2x8x8x128xbf16> to vector<1x8x8x128xbf16>
    %23 = vector.shape_cast %22 : vector<1x8x8x128xbf16> to vector<8x8x128xbf16>
    %c1_28 = arith.constant 1 : index
    %c1_29 = arith.constant 1 : index
    %c0_30 = arith.constant 0 : index
    %24 = vector.load %arg7[%c1_28, %c1_29, %c0_30] : memref<23x16x128xbf16, #tpu.memory_space<vmem>>, vector<8x8x128xbf16>
    tpu.vector_store %arg7[%c1_28, %c1_29, %c0_30], %23 {strides = array<i32>} : memref<23x16x128xbf16, #tpu.memory_space<vmem>>, vector<8x8x128xbf16>,
    %25 = vector.extract_strided_slice %11 {offsets = [1, 0, 0, 0], sizes = [1, 8, 8, 128], strides = [1, 1, 1, 1]} : vector<2x8x8x128xbf16> to vector<1x8x8x128xbf16>
    %26 = vector.shape_cast %25 : vector<1x8x8x128xbf16> to vector<8x8x128xbf16>
    %c11 = arith.constant 11 : index
    %c1_31 = arith.constant 1 : index
    %c0_32 = arith.constant 0 : index
    %27 = vector.load %arg7[%c11, %c1_31, %c0_32] : memref<23x16x128xbf16, #tpu.memory_space<vmem>>, vector<8x8x128xbf16>
    tpu.vector_store %arg7[%c11, %c1_31, %c0_32], %26 {strides = array<i32>} : memref<23x16x128xbf16, #tpu.memory_space<vmem>>, vector<8x8x128xbf16>,
    %c0_33 = arith.constant 0 : index
    %c0_34 = arith.constant 0 : index
    %c0_35 = arith.constant 0 : index
    %28 = vector.load %arg7[%c0_33, %c0_34, %c0_35] : memref<23x16x128xbf16, #tpu.memory_space<vmem>>, vector<23x16x128xbf16>
    %29 = vector.shape_cast %28 : vector<23x16x128xbf16> to vector<368x128xbf16>
    %30 = vector.extract_strided_slice %29 {offsets = [0, 0], sizes = [320, 128], strides = [1, 1]} : vector<368x128xbf16> to vector<320x128xbf16>
    %31 = vector.extract_strided_slice %29 {offsets = [1, 0], sizes = [320, 128], strides = [1, 1]} : vector<368x128xbf16> to vector<320x128xbf16>
    %32 = vector.extract_strided_slice %29 {offsets = [2, 0], sizes = [320, 128], strides = [1, 1]} : vector<368x128xbf16> to vector<320x128xbf16>
    %33 = vector.extract_strided_slice %29 {offsets = [16, 0], sizes = [320, 128], strides = [1, 1]} : vector<368x128xbf16> to vector<320x128xbf16>
    %34 = vector.extract_strided_slice %29 {offsets = [17, 0], sizes = [320, 128], strides = [1, 1]} : vector<368x128xbf16> to vector<320x128xbf16>
    %35 = vector.extract_strided_slice %29 {offsets = [18, 0], sizes = [320, 128], strides = [1, 1]} : vector<368x128xbf16> to vector<320x128xbf16>
    %36 = vector.extract_strided_slice %29 {offsets = [32, 0], sizes = [320, 128], strides = [1, 1]} : vector<368x128xbf16> to vector<320x128xbf16>
    %37 = vector.extract_strided_slice %29 {offsets = [33, 0], sizes = [320, 128], strides = [1, 1]} : vector<368x128xbf16> to vector<320x128xbf16>
    %38 = vector.extract_strided_slice %29 {offsets = [34, 0], sizes = [320, 128], strides = [1, 1]} : vector<368x128xbf16> to vector<320x128xbf16>
    %39 = tpu.concatenate %30, %31, %32, %33, %34, %35, %36, %37, %38 in 1 : vector<320x128xbf16>, vector<320x128xbf16>, vector<320x128xbf16>, vector<320x128xbf16>, vector<320x128xbf16>, vector<320x128xbf16>, vector<320x128xbf16>, vector<320x128xbf16>, vector<320x128xbf16> -> vector<320x1152xbf16>
    %c0_36 = arith.constant 0 : index
    %c0_37 = arith.constant 0 : index
    %40 = vector.load %arg4[%c0_36, %c0_37] : memref<1152x128xbf16, #tpu.memory_space<vmem>>, vector<1152x128xbf16>
    %cst_38 = arith.constant dense<0.000000e+00> : vector<320x128xf32>
    %41 = tpu.matmul %39, %40, %cst_38 {dimension_numbers = #tpu.dot_dimension_numbers<[1], [0], [0], [1], [0, 0, 1, 1], [], []>} : vector<320x1152xbf16>, vector<1152x128xbf16>, vector<320x128xf32> -> vector<320x128xf32>
    %c0_39 = arith.constant 0 : index
    %c0_40 = arith.constant 0 : index
    %42 = vector.load %arg5[%c0_39, %c0_40] : memref<1x128xf32, #tpu.memory_space<vmem>>, vector<1x128xf32>
    %43 = vector.broadcast %42 : vector<1x128xf32> to vector<320x128xf32>
    %44 = arith.addf %41, %43 : vector<320x128xf32>
    %45 = vector.shape_cast %44 : vector<320x128xf32> to vector<2x10x16x128xf32>
    %46 = vector.extract_strided_slice %45 {offsets = [0, 0, 0, 0], sizes = [2, 8, 8, 128], strides = [1, 1, 1, 1]} : vector<2x10x16x128xf32> to vector<2x8x8x128xf32>
    %c0_41 = arith.constant 0 : index
    %c0_42 = arith.constant 0 : index
    %c0_43 = arith.constant 0 : index
    %c0_44 = arith.constant 0 : index
    %47 = vector.load %arg6[%c0_41, %c0_42, %c0_43, %c0_44] : memref<2x8x8x128xf32, #tpu.memory_space<vmem>>, vector<2x8x8x128xf32>
    tpu.vector_store %arg6[%c0_41, %c0_42, %c0_43, %c0_44], %46 {strides = array<i32>} : memref<2x8x8x128xf32, #tpu.memory_space<vmem>>, vector<2x8x8x128xf32>,
    return
  }
  func.func @transform_0(%arg0: i32) -> i32 {
    %c0_i32 = arith.constant 0 : i32
    %c0_i32_0 = arith.constant 0 : i32
    return %c0_i32 : i32
  }
  func.func @transform_1(%arg0: i32) -> (i32, i32, i32, i32) {
    %c0_i32 = arith.constant 0 : i32
    %c0_i32_0 = arith.constant 0 : i32
    %c0_i32_1 = arith.constant 0 : i32
    %c0_i32_2 = arith.constant 0 : i32
    return %arg0, %c0_i32, %c0_i32_0, %c0_i32_1 : i32, i32, i32, i32
  }
  func.func @transform_2(%arg0: i32) -> (i32, i32, i32, i32) {
    %c0_i32 = arith.constant 0 : i32
    %c0_i32_0 = arith.constant 0 : i32
    %c0_i32_1 = arith.constant 0 : i32
    %c0_i32_2 = arith.constant 0 : i32
    return %arg0, %c0_i32, %c0_i32_0, %c0_i32_1 : i32, i32, i32, i32
  }
  func.func @transform_3(%arg0: i32) -> (i32, i32) {
    %c0_i32 = arith.constant 0 : i32
    %c0_i32_0 = arith.constant 0 : i32
    %c0_i32_1 = arith.constant 0 : i32
    return %c0_i32, %c0_i32_0 : i32, i32
  }
  func.func @transform_4(%arg0: i32) -> (i32, i32) {
    %c0_i32 = arith.constant 0 : i32
    %c0_i32_0 = arith.constant 0 : i32
    %c0_i32_1 = arith.constant 0 : i32
    return %c0_i32, %c0_i32_0 : i32, i32
  }
  func.func @transform_5(%arg0: i32) -> (i32, i32, i32, i32) {
    %c0_i32 = arith.constant 0 : i32
    %c0_i32_0 = arith.constant 0 : i32
    %c0_i32_1 = arith.constant 0 : i32
    %c0_i32_2 = arith.constant 0 : i32
    return %arg0, %c0_i32, %c0_i32_0, %c0_i32_1 : i32, i32, i32, i32
  }
}

</mosaic_0001>

<bundles_post_ra>
// kernel: tpu_custom_call.1
= control target key start
LH: loop header
LB: loop body
LE: loop exit
PB: predicated region body
PF: predicated region fallthrough
CT: control target
= control target key end

     0   :  { %10 = vsyncpa [#allocation6], 0  ;;  %s3714_s0 = inlined_call_operand.hbm [shape: f32[2], index: 0, kind: input, shape index: {}]   ;;  %s3715_s1 = inlined_call_operand.hbm [shape: f32[2,8,8,128], index: 1, kind: input, shape index: {}]   ;;  %s3716_s2 = inlined_call_operand.hbm [shape: f32[2,8,8,128], index: 2, kind: input, shape index: {}]   ;;  %s3717_s3 = inlined_call_operand.hbm [shape: bf16[1152,128], index: 3, kind: input, shape index: {}]   ;;  %s3718_s4 = inlined_call_operand.vmem [shape: f32[1,128], index: 4, kind: input, shape index: {}]   ;;  %s3719_s5 = inlined_call_operand.hbm [shape: f32[2,8,8,128], index: 5, kind: output, shape index: {}]  }
   0x1   :  { %11 = vsyncpa [#allocation4], 0 }
   0x2   :  { %12 = vsyncpa [#allocation9], 0 }
   0x3   :  { %13 = vsyncpa [#allocation5], 0  ;;  %s2760_s18 = smov [#allocation8]   ;;  %s2761_s20 = smov [#allocation7]  }
   0x4   :  { %s39_s19 = sshll.u32 %s2760_s18, 4  ;;  %s27_s21 = sshll.u32 %s2761_s20, 4  ;;  %s40_s19 = int_to_ptr.vmem [resolvable:$true] %s39_s19  ;;  %s28_s21 = int_to_ptr.vmem [resolvable:$true] %s27_s21 }
   0x5   :  { %s2654_s24 = scalar_lea.hbm %s3716_s2, 2048 }
   0x6   :  { %p2655_p0 = scmp.ne.s32.totalorder %s3716_s2, %s2654_s24  ;;  %p2658_p1 = scmp.lt.u32.totalorder %s2654_s24, %s3716_s2 }
   0x8   :  { %p2660_p2 = pnand %p2658_p1, %p2655_p0 }
   0xa   :  { %2663 = shalt.err (!%p2660_p2)
}
   0xb   :  { %s2664_s29 = scalar_lea.vmem %s40_s19, 2048  ;;  %p2669_p4 = scmp.lt.s32.totalorder %s40_s19, %s40_s19 }
   0xc   :  { %p2665_p3 = scmp.ne.s32.totalorder %s40_s19, %s2664_s29  ;;  %p2670_p5 = scmp.lt.s32.totalorder %s2664_s29, %s2664_s29 }
   0xe   :  { %p2671_p6 = por %p2670_p5, %p2669_p4 }
  0x10   :  { %p2672_p7 = pnand %p2671_p6, %p2665_p3 }
  0x12   :  { %2675 = shalt.err (!%p2672_p7)
}
  0x13   :  { %s2762_s30 = smov 128   ;;  %s2763_s6 = smov 8  }
  0x14   :  { %45 = dma.hbm_to_vmem [thread:$0]  %s3716_s2, 2048, %s40_s19, [#allocation9], %s2762_s30, %s2762_s30, %s2763_s6  }
  0x15   :  { %s2676_s11 = scalar_lea.hbm %s3714_s0, 16 }
  0x16   :  { %p2677_p8 = scmp.ne.s32.totalorder %s3714_s0, %s2676_s11  ;;  %p2680_p9 = scmp.lt.u32.totalorder %s2676_s11, %s3714_s0 }
  0x18   :  { %p2682_p10 = pnand %p2680_p9, %p2677_p8 }
  0x1a   :  { %2685 = shalt.err (!%p2682_p10)
}
  0x1b   :  { %s2764_s16 = smov [#allocation3]   ;;  %s2686_s20 = scalar_lea.hbm %s3715_s1, 2048 }
  0x1c   :  { %21 = dma.hbm_to_smem %s3714_s0, 16, %s2764_s16, [#allocation6]  }
  0x1d   :  { %p2687_p11 = scmp.ne.s32.totalorder %s3715_s1, %s2686_s20  ;;  %p2690_p12 = scmp.lt.u32.totalorder %s2686_s20, %s3715_s1 }
  0x1f   :  { %p2692_p13 = pnand %p2690_p12, %p2687_p11 }
  0x21   :  { %2695 = shalt.err (!%p2692_p13)
}
  0x22   :  { %s2696_s26 = scalar_lea.vmem %s28_s21, 2048  ;;  %p2701_p1 = scmp.lt.s32.totalorder %s28_s21, %s28_s21 }
  0x23   :  { %p2697_p0 = scmp.ne.s32.totalorder %s28_s21, %s2696_s26  ;;  %p2702_p2 = scmp.lt.s32.totalorder %s2696_s26, %s2696_s26 }
  0x25   :  { %p2703_p3 = por %p2702_p2, %p2701_p1 }
  0x27   :  { %p2704_p4 = pnand %p2703_p3, %p2697_p0 }
  0x29   :  { %2707 = shalt.err (!%p2704_p4)
}
  0x2a   :  { %33 = dma.hbm_to_vmem [thread:$0]  %s3715_s1, 2048, %s28_s21, [#allocation4], %s2762_s30, %s2762_s30, %s2763_s6  }
  0x2b   :  { %s2765_s28 = smov [#allocation10]   ;;  %s2708_s9 = scalar_lea.hbm %s3717_s3, 9216 }
  0x2c   :  { %s51_s29 = sshll.u32 %s2765_s28, 4  ;;  %p2709_p5 = scmp.ne.s32.totalorder %s3717_s3, %s2708_s9  ;;  %s52_s29 = int_to_ptr.vmem [resolvable:$true] %s51_s29 }
  0x2d   :  { %p2712_p6 = scmp.lt.u32.totalorder %s2708_s9, %s3717_s3 }
  0x2f   :  { %p2714_p7 = pnand %p2712_p6, %p2709_p5 }
  0x31   :  { %2717 = shalt.err (!%p2714_p7)
}
  0x32   :  { %s2718_s14 = scalar_lea.vmem %s52_s29, 9216  ;;  %p2723_p9 = scmp.lt.s32.totalorder %s52_s29, %s52_s29 }
  0x33   :  { %p2719_p8 = scmp.ne.s32.totalorder %s52_s29, %s2718_s14  ;;  %p2724_p10 = scmp.lt.s32.totalorder %s2718_s14, %s2718_s14 }
  0x35   :  { %p2725_p11 = por %p2724_p10, %p2723_p9 }
  0x37   :  { %p2726_p12 = pnand %p2725_p11, %p2719_p8 }
  0x39   :  { %2729 = shalt.err (!%p2726_p12)
}
  0x3a   :  { %s2766_s1 = smov 64   ;;  %s2767_s21 = smov 4  }
  0x3b   :  { %57 = dma.hbm_to_vmem [thread:$0]  %s3717_s3, 9216, %s52_s29, [#allocation9], %s2766_s1, %s2766_s1, %s2767_s21  }
  0x3c   :  { %2752 = dma.done.wait [#allocation6], 16  }
  0x3d   :  { %2753 = vsyncadd [#allocation6], 4294967280 }
  0x3e   :  { %2754 = dma.done.wait [#allocation4], 2048  }
  0x3f   :  { %2755 = vsyncadd [#allocation4], 4294965248 }
  0x40   :  { %2756 = dma.done.wait [#allocation9], 11264  }
  0x41   :  { %2757 = vsyncadd [#allocation9], 4294956032 }
  0x42   :  { %72 = sfence }
  0x43   :  { %v2571_v0 = vld [vmem:[#allocation10] sm:$0xff]   ;;  %v2768_v1 = vmov 0   ;;  %v2573_v3 = vld [vmem:[#allocation10 + $0x8] sm:$0xff]   ;;  %v2575_v5 = vld [vmem:[#allocation10 + $0x10] sm:$0xff]   ;;  %vm190_vm0 = vcmask 1040384   ;;  %s74_s3 = sld [smem:[#allocation3]] }
  0x44   :  { %1426 = vmatprep.subr.bf16.mxu1 %v2768_v1  ;;  %1595 = vmatprep.subr.bf16.mxu0 %v2768_v1  ;;  %v2572_v2 = vld [vmem:[#allocation10 + $0x80] sm:$0xff]   ;;  %v2574_v4 = vld [vmem:[#allocation10 + $0x88] sm:$0xff]   ;;  %v2576_v6 = vld [vmem:[#allocation10 + $0x90] sm:$0xff]   ;;  %s2306_s17 = sld [smem:[#allocation3 + $0x1]]  ;;  %vm262_vm1 = vcmask 1044484   ;;  %vm410_vm6 = vcmask 1044480  }
  0x45   :  { %1427 = vmatpush1.bf16.msra.mxu1 %v2571_v0  ;;  %1596 = vmatpush1.bf16.msra.mxu0 %v2572_v2  ;;  %v2577_v7 = vld [vmem:[#allocation10 + $0x18] sm:$0xff]   ;;  %v2579_v9 = vld [vmem:[#allocation10 + $0x20] sm:$0xff]   ;;  %v2581_v11 = vld [vmem:[#allocation10 + $0x28] sm:$0xff]   ;;  %vm191_vm2 = vsmask.f32 256  ;;  %vm755_vm9 = vcmask 1046528  }
  0x46   :  { %1428 = vmatprep.subr.bf16.mxu1 %v2768_v1  ;;  %1597 = vmatprep.subr.bf16.mxu0 %v2768_v1  ;;  %v2578_v8 = vld [vmem:[#allocation10 + $0x98] sm:$0xff]   ;;  %v2580_v10 = vld [vmem:[#allocation10 + $0xa0] sm:$0xff]   ;;  %v2582_v12 = vld [vmem:[#allocation10 + $0xa8] sm:$0xff]   ;;  %vm263_vm4 = vsmask.f32 7954 }
  0x47   :  { %v2583_v13 = vld [vmem:[#allocation10 + $0x30] sm:$0xff]   ;;  %v2585_v15 = vld [vmem:[#allocation10 + $0x38] sm:$0xff]   ;;  %v2587_v17 = vld [vmem:[#allocation10 + $0x40] sm:$0xff]   ;;  %vm411_vm7 = vsmask.f32 4354 }
  0x48   :  { %v2584_v14 = vld [vmem:[#allocation10 + $0xb0] sm:$0xff]   ;;  %v2586_v16 = vld [vmem:[#allocation10 + $0xb8] sm:$0xff]   ;;  %v2588_v18 = vld [vmem:[#allocation10 + $0xc0] sm:$0xff]   ;;  %vm549_vm10 = vsmask.f32 7424 }
  0x49   :  { %1429 = vmatpush1.bf16.msra.mxu1 %v2573_v3  ;;  %1598 = vmatpush1.bf16.msra.mxu0 %v2574_v4  ;;  %v2589_v19 = vld [vmem:[#allocation10 + $0x48] sm:$0xff]   ;;  %v196_v22 = vld [vmem:[#allocation2 + $0x8] sm:$0x1]  ;;  %vm2872_vm3 = vmand %vm190_vm0, %vm191_vm2  ;;  %v2891_v35 = vstv %s74_s3 }
  0x4a   :  { %1430 = vmatprep.subr.bf16.mxu1 %v2768_v1  ;;  %1599 = vmatprep.subr.bf16.mxu0 %v2768_v1  ;;  %v2590_v20 = vld [vmem:[#allocation10 + $0xc8] sm:$0xff]   ;;  %v268_v25 = vld [vmem:[#allocation2 + $0x8] sm:$0x10]  ;;  %v75_v26 = vld [vmem:[#allocation7] sm:$0xff]  ;;  %v197_v29 = vsel %vm2872_vm3, 0, %v196_v22  ;;  %v2893_v36 = vstv %s2306_s17 }
  0x4b   :  { %v193_v21 = vld [vmem:[#allocation2] sm:$0x1]  ;;  %v265_v24 = vld [vmem:[#allocation2] sm:$0x10]  ;;  %v109_v27 = vld [vmem:[#allocation8] sm:$0xff]  ;;  %v92_v39 = vmul.f32 %v2891_v35, %v75_v26 }
  0x4c   :  { %v194_v28 = vsel %vm2872_vm3, 0, %v193_v21  ;;  %vm2882_vm5 = vmand %vm262_vm1, %vm263_vm4  ;;  %198 = vst [vmem:[#allocation2 + $0x8] sm:$0x1] %v197_v29  ;;  %v2591_v33 = vld [vmem:[#allocation10 + $0x50] sm:$0xff]   ;;  %v76_v37 = vld [vmem:[#allocation7 + $0x8] sm:$0xff]  ;;  %v126_v40 = vmul.f32 %v2893_v36, %v109_v27 }
  0x4d   :  { %1431 = vmatpush1.bf16.msra.mxu1 %v2575_v5  ;;  %1600 = vmatpush1.bf16.msra.mxu0 %v2576_v6  ;;  %195 = vst [vmem:[#allocation2] sm:$0x1] %v194_v28  ;;  %v266_v31 = vsel %vm2882_vm5, 0, %v265_v24  ;;  %v269_v32 = vsel %vm2882_vm5, 0, %v268_v25  ;;  %v2592_v34 = vld [vmem:[#allocation10 + $0xd0] sm:$0xff]   ;;  %v110_v38 = vld [vmem:[#allocation8 + $0x8] sm:$0xff]  ;;  %v93_v41 = vmul.f32 %v2891_v35, %v76_v37  ;;  %vm2928_vm8 = vmand %vm410_vm6, %vm411_vm7 }
  0x4e   :  { %1432 = vmatprep.subr.bf16.mxu1 %v2768_v1  ;;  %1601 = vmatprep.subr.bf16.mxu0 %v2768_v1  ;;  %267 = vst [vmem:[#allocation2] sm:$0x10] %v266_v31  ;;  %270 = vst [vmem:[#allocation2 + $0x8] sm:$0x10] %v269_v32  ;;  %v199_v42 = vld [vmem:[#allocation2 + $0x10] sm:$0x1]  ;;  %v127_v45 = vmul.f32 %v2893_v36, %v110_v38  ;;  %v142_v48 = vadd.f32 %v126_v40, %v92_v39 }
  0x4f   :  { %334 = vst [vmem:[#allocation2] sm:$0xff] %v2768_v1  ;;  %v271_v43 = vld [vmem:[#allocation2 + $0x10] sm:$0x10]  ;;  %v200_v46 = vsel %vm2872_vm3, 0, %v199_v42  ;;  %v77_v49 = vld [vmem:[#allocation7 + $0x10] sm:$0xff]  ;;  %v2595_v60 = vld [vmem:[#allocation10 + $0x60] sm:$0xff]  }
  0x50   :  { %v2593_v44 = vld [vmem:[#allocation10 + $0x58] sm:$0xff]   ;;  %v272_v47 = vsel %vm2882_vm5, 0, %v271_v43  ;;  %201 = vst [vmem:[#allocation2 + $0x10] sm:$0x1] %v200_v46  ;;  %v143_v50 = vadd.f32 %v127_v45, %v93_v41  ;;  %v94_v51 = vmul.f32 %v2891_v35, %v77_v49  ;;  %v111_v52 = vld [vmem:[#allocation8 + $0x10] sm:$0xff]  ;;  %v158_v56 = vmax.f32 %v142_v48, 0.0 }
  0x51   :  { %1433 = vmatpush1.bf16.msra.mxu1 %v2577_v7  ;;  %1602 = vmatpush1.bf16.msra.mxu0 %v2578_v8  ;;  %273 = vst [vmem:[#allocation2 + $0x10] sm:$0x10] %v272_v47  ;;  %v202_v53 = vld [vmem:[#allocation2 + $0x18] sm:$0x1]  ;;  %v274_v54 = vld [vmem:[#allocation2 + $0x18] sm:$0x10]  ;;  %v128_v57 = vmul.f32 %v2893_v36, %v111_v52 }
  0x52   :  { %1434 = vmatprep.subr.bf16.mxu1 %v2768_v1  ;;  %1603 = vmatprep.subr.bf16.mxu0 %v2768_v1  ;;  %v2594_v55 = vld [vmem:[#allocation10 + $0xd8] sm:$0xff]   ;;  %v203_v58 = vsel %vm2872_vm3, 0, %v202_v53  ;;  %v275_v59 = vsel %vm2882_vm5, 0, %v274_v54  ;;  %v159_v61 = vmax.f32 %v143_v50, 0.0  ;;  %v174_v63 = vpack.c.bf16 %v158_v56, %v158_v56  ;;  %v205_v4 = vld [vmem:[#allocation2 + $0x20] sm:$0x1] }
  0x53   :  { %204 = vst [vmem:[#allocation2 + $0x18] sm:$0x1] %v203_v58  ;;  %276 = vst [vmem:[#allocation2 + $0x18] sm:$0x10] %v275_v59  ;;  %v78_v62 = vld [vmem:[#allocation7 + $0x18] sm:$0xff]  ;;  %v144_v0 = vadd.f32 %v128_v57, %v94_v51  ;;  %v206_v8 = vsel %vm2872_vm3, 0, %v205_v4 }
  0x54   :  { %v95_v2 = vmul.f32 %v2891_v35, %v78_v62  ;;  %v112_v3 = vld [vmem:[#allocation8 + $0x18] sm:$0xff]  ;;  %v277_v5 = vld [vmem:[#allocation2 + $0x20] sm:$0x10]  ;;  %v175_v6 = vpack.c.bf16 %v159_v61, %v159_v61  ;;  %207 = vst [vmem:[#allocation2 + $0x20] sm:$0x1] %v206_v8  ;;  %v2599_v42 = vld [vmem:[#allocation10 + $0x70] sm:$0xff]  }
  0x55   :  { %1435 = vmatpush1.bf16.msra.mxu1 %v2579_v9  ;;  %1604 = vmatpush1.bf16.msra.mxu0 %v2580_v10  ;;  %v129_v7 = vmul.f32 %v2893_v36, %v112_v3  ;;  %v278_v9 = vsel %vm2882_vm5, 0, %v277_v5  ;;  %v2596_v10 = vld [vmem:[#allocation10 + $0xe0] sm:$0xff]   ;;  %v208_v22 = vld [vmem:[#allocation2 + $0x28] sm:$0x1]  ;;  %v280_v28 = vld [vmem:[#allocation2 + $0x28] sm:$0x10] }
  0x56   :  { %1436 = vmatprep.subr.bf16.mxu1 %v2768_v1  ;;  %1605 = vmatprep.subr.bf16.mxu0 %v2768_v1  ;;  %279 = vst [vmem:[#allocation2 + $0x20] sm:$0x10] %v278_v9  ;;  %v209_v27 = vsel %vm2872_vm3, 0, %v208_v22  ;;  %v2598_v29 = vld [vmem:[#allocation10 + $0xe8] sm:$0xff]   ;;  %v2937_v43 = vrot.slane %v2768_v1, 1  ;;  %v2600_v47 = vld [vmem:[#allocation10 + $0xf0] sm:$0xff]  }
  0x57   :  { %210 = vst [vmem:[#allocation2 + $0x28] sm:$0x1] %v209_v27  ;;  %v80_v46 = vld [vmem:[#allocation7 + $0x28] sm:$0xff]  ;;  %v211_v53 = vld [vmem:[#allocation2 + $0x30] sm:$0x1]  ;;  %v115_v8 = vld [vmem:[#allocation8 + $0x30] sm:$0xff] }
  0x58   :  { %v416_v38 = vld [vmem:[#allocation2 + $0x10] sm:$0x1f]  ;;  %v97_v51 = vmul.f32 %v2891_v35, %v80_v46  ;;  %v114_v52 = vld [vmem:[#allocation8 + $0x28] sm:$0xff]  ;;  %v214_v9 = vld [vmem:[#allocation2 + $0x38] sm:$0x1] }
  0x59   :  { %1437 = vmatpush1.bf16.msra.mxu1 %v2581_v11  ;;  %1606 = vmatpush1.bf16.msra.mxu0 %v2582_v12  ;;  %v346_v11 = vshrl.u32 %v174_v63, 16  ;;  %v349_v12 = vshll.u32 %v174_v63, 16  ;;  %v131_v58 = vmul.f32 %v2893_v36, %v114_v52  ;;  %v283_v59 = vld [vmem:[#allocation2 + $0x30] sm:$0x10]  ;;  %v212_v63 = vsel %vm2872_vm3, 0, %v211_v53  ;;  %v2636_v23 = vld [vmem:[#allocation10 + $0x208] sm:$0xff]  }
  0x5a   :  { %1438 = vmatprep.subr.bf16.mxu1 %v2768_v1  ;;  %1607 = vmatprep.subr.bf16.mxu0 %v2768_v1  ;;  %213 = vst [vmem:[#allocation2 + $0x30] sm:$0x1] %v212_v63  ;;  %v217_v63 = vld [vmem:[#allocation2 + $0x40] sm:$0x1]  ;;  %v2644_v30 = vld [vmem:[#allocation10 + $0x180] sm:$0xff]  }
  0x5b   :  { %v348_v24 = vrot.slane %v346_v11, 7  ;;  %v147_v3 = vadd.f32 %v131_v58, %v97_v51 }
  0x5d   :  { %1439 = vmatpush1.bf16.msra.mxu1 %v2583_v13  ;;  %1608 = vmatpush1.bf16.msra.mxu0 %v2584_v14  ;;  %v160_v13 = vmax.f32 %v144_v0, 0.0  ;;  %v79_v14 = vld [vmem:[#allocation7 + $0x20] sm:$0xff]  ;;  %v351_v37 = vor.u32 %v349_v12, %v348_v24  ;;  %v422_v61 = vld [vmem:[#allocation2 + $0x20] sm:$0x1f]  ;;  %v284_v0 = vsel %vm2882_vm5, 0, %v283_v59 }
  0x5e   :  { %1440 = vmatprep.subr.bf16.mxu1 %v2768_v1  ;;  %1609 = vmatprep.subr.bf16.mxu0 %v2768_v1  ;;  %v96_v21 = vmul.f32 %v2891_v35, %v79_v14  ;;  %285 = vst [vmem:[#allocation2 + $0x30] sm:$0x10] %v284_v0  ;;  %v289_v0 = vld [vmem:[#allocation2 + $0x40] sm:$0x10] }
  0x5f   :  { %v176_v25 = vpack.c.bf16 %v160_v13, %v160_v13  ;;  %v163_v13 = vmax.f32 %v147_v3, 0.0 }
  0x61   :  { %1441 = vmatpush1.bf16.msra.mxu1 %v2585_v15  ;;  %1610 = vmatpush1.bf16.msra.mxu0 %v2586_v16  ;;  %v113_v15 = vld [vmem:[#allocation8 + $0x20] sm:$0xff]  ;;  %v2597_v16 = vld [vmem:[#allocation10 + $0x68] sm:$0xff]   ;;  %v360_v39 = vshrl.u32 %v176_v25, 16  ;;  %v363_v40 = vshll.u32 %v176_v25, 16  ;;  %v179_v22 = vpack.c.bf16 %v163_v13, %v163_v13 }
  0x62   :  { %1442 = vmatprep.subr.bf16.mxu1 %v2768_v1  ;;  %1611 = vmatprep.subr.bf16.mxu0 %v2768_v1  ;;  %v130_v26 = vmul.f32 %v2893_v36, %v113_v15  ;;  %v132_v15 = vmul.f32 %v2893_v36, %v115_v8  ;;  %v2607_v8 = vld [vmem:[#allocation10 + $0x110] sm:$0xff]  }
  0x63   :  { %v362_v49 = vrot.slane %v360_v39, 7 }
  0x64   :  { %v146_v41 = vadd.f32 %v130_v26, %v96_v21 }
  0x65   :  { %1443 = vmatpush1.bf16.msra.mxu1 %v2587_v17  ;;  %1612 = vmatpush1.bf16.msra.mxu0 %v2588_v18  ;;  %v413_v17 = vld [vmem:[#allocation2 + $0x8] sm:$0x1f]  ;;  %v353_v18 = vshrl.u32 %v175_v6, 16 }
  0x66   :  { %1444 = vmatprep.subr.bf16.mxu1 %v2768_v1  ;;  %1613 = vmatprep.subr.bf16.mxu0 %v2768_v1  ;;  %v414_v48 = vsel %vm2928_vm8, %v351_v37, %v413_v17  ;;  %v162_v50 = vmax.f32 %v146_v41, 0.0  ;;  %v2602_v17 = vld [vmem:[#allocation10 + $0xf8] sm:$0xff]   ;;  %v2604_v41 = vld [vmem:[#allocation10 + $0x180] sm:$0xff]  }
  0x67   :  { %v355_v32 = vrot.slane %v353_v18, 7  ;;  %415 = vst [vmem:[#allocation2 + $0x8] sm:$0x1f] %v414_v48  ;;  %v428_v48 = vld [vmem:[#allocation2 + $0x30] sm:$0x1f] }
  0x68   :  { %v178_v62 = vpack.c.bf16 %v162_v50, %v162_v50  ;;  %v116_v50 = vld [vmem:[#allocation8 + $0x38] sm:$0xff] }
  0x69   :  { %1445 = vmatpush1.bf16.msra.mxu1 %v2589_v19  ;;  %1614 = vmatpush1.bf16.msra.mxu0 %v2590_v20  ;;  %v356_v19 = vshll.u32 %v175_v6, 16  ;;  %v145_v20 = vadd.f32 %v129_v7, %v95_v2  ;;  %v81_v7 = vld [vmem:[#allocation7 + $0x30] sm:$0xff] }
  0x6a   :  { %1446 = vmatprep.subr.bf16.mxu1 %v2768_v1  ;;  %1615 = vmatprep.subr.bf16.mxu0 %v2768_v1  ;;  %v374_v5 = vshrl.u32 %v178_v62, 16  ;;  %v377_v6 = vshll.u32 %v178_v62, 16  ;;  %v98_v14 = vmul.f32 %v2891_v35, %v81_v7  ;;  %v133_v62 = vmul.f32 %v2893_v36, %v116_v50 }
  0x6c   :  { %v376_v18 = vrot.slane %v374_v5, 7  ;;  %v148_v26 = vadd.f32 %v132_v15, %v98_v14  ;;  %v220_v5 = vld [vmem:[#allocation2 + $0x48] sm:$0x1] }
  0x6d   :  { %1447 = vmatpush1.bf16.msra.mxu1 %v2591_v33  ;;  %1616 = vmatpush1.bf16.msra.mxu0 %v2592_v34  ;;  %v161_v33 = vmax.f32 %v145_v20, 0.0  ;;  %v281_v34 = vsel %vm2882_vm5, 0, %v280_v28  ;;  %v2608_v14 = vld [vmem:[#allocation10 + $0x190] sm:$0xff]  }
  0x6e   :  { %1448 = vmatprep.subr.bf16.mxu1 %v2768_v1  ;;  %1617 = vmatprep.subr.bf16.mxu0 %v2768_v1  ;;  %282 = vst [vmem:[#allocation2 + $0x28] sm:$0x10] %v281_v34  ;;  %v2963_v24 = vld [vmem:[#allocation2 + $0x8] sm:$0xff]  ;;  %v379_v25 = vor.u32 %v377_v6, %v376_v18  ;;  %v2603_v34 = vld [vmem:[#allocation10 + $0x100] sm:$0xff]   ;;  %v223_v18 = vld [vmem:[#allocation2 + $0x50] sm:$0x1] }
  0x6f   :  { %v177_v45 = vpack.c.bf16 %v161_v33, %v161_v33  ;;  %v558_v27 = vshll.u32 %v2963_v24, 16  ;;  %1627 = vmatprep.mubr.bf16.mxu0 %v2963_v24  ;;  %v757_v28 = vrot.slane %v2963_v24, 1  ;;  %v381_v33 = vshrl.u32 %v179_v22, 16 }
  0x71   :  { %1449 = vmatpush1.bf16.msra.mxu1 %v2593_v44  ;;  %1618 = vmatpush1.bf16.msra.mxu0 %v2594_v55  ;;  %v358_v44 = vor.u32 %v356_v19, %v355_v32  ;;  %v419_v55 = vld [vmem:[#allocation2 + $0x18] sm:$0x1f]  ;;  %v367_v56 = vshrl.u32 %v177_v45, 16  ;;  %v370_v57 = vshll.u32 %v177_v45, 16  ;;  %v215_v19 = vsel %vm2872_vm3, 0, %v214_v9  ;;  %v82_v45 = vld [vmem:[#allocation7 + $0x38] sm:$0xff] }
  0x72   :  { %1450 = vmatprep.subr.bf16.mxu1 %v2768_v1  ;;  %1619 = vmatprep.subr.bf16.mxu0 %v2768_v1  ;;  %216 = vst [vmem:[#allocation2 + $0x38] sm:$0x1] %v215_v19  ;;  %v562_v32 = vshrl.u32 %v2963_v24, 16  ;;  %v560_v39 = vrot.slane %v558_v27, 1  ;;  %v290_v27 = vsel %vm2882_vm5, 0, %v289_v0 }
  0x73   :  { %v417_v54 = vsel %vm2928_vm8, %v358_v44, %v416_v38  ;;  %v369_v2 = vrot.slane %v367_v56, 7  ;;  %v384_v44 = vshll.u32 %v179_v22, 16  ;;  %v2605_v56 = vld [vmem:[#allocation10 + $0x108] sm:$0xff]   ;;  %v83_v22 = vld [vmem:[#allocation7 + $0x40] sm:$0xff]  ;;  %291 = vst [vmem:[#allocation2 + $0x40] sm:$0x10] %v290_v27 }
  0x74   :  { %418 = vst [vmem:[#allocation2 + $0x10] sm:$0x1f] %v417_v54  ;;  %v561_v51 = vsel %vm549_vm10, %v2937_v43, %v560_v39  ;;  %v564_v52 = vor.u32 %v562_v32, %v560_v39  ;;  %v2610_v39 = vld [vmem:[#allocation10 + $0x198] sm:$0xff]  }
  0x75   :  { %1451 = vmatpush1.bf16.msra.mxu1 %v2595_v60  ;;  %1620 = vmatpush1.bf16.msra.mxu0 %v2596_v10  ;;  %v365_v60 = vor.u32 %v363_v40, %v362_v49  ;;  %v2601_v10 = vld [vmem:[#allocation10 + $0x78] sm:$0xff]   ;;  %v372_v11 = vor.u32 %v370_v57, %v369_v2  ;;  %v425_v12 = vld [vmem:[#allocation2 + $0x28] sm:$0x1f]  ;;  %v758_v40 = vsel %vm755_vm9, %v2937_v43, %v757_v28  ;;  %v164_v49 = vmax.f32 %v148_v26, 0.0  ;;  %v2606_v57 = vld [vmem:[#allocation10 + $0x188] sm:$0xff]  }
  0x76   :  { %1452 = vmatprep.subr.bf16.mxu1 %v2768_v1  ;;  %1621 = vmatprep.subr.bf16.mxu0 %v2768_v1  ;;  %v426_v38 = vsel %vm2928_vm8, %v379_v25, %v425_v12  ;;  %v2609_v25 = vld [vmem:[#allocation10 + $0x118] sm:$0xff]  }
  0x77   :  { %v420_v4 = vsel %vm2928_vm8, %v365_v60, %v419_v55  ;;  %v423_v21 = vsel %vm2928_vm8, %v372_v11, %v422_v61  ;;  %427 = vst [vmem:[#allocation2 + $0x28] sm:$0x1f] %v426_v38  ;;  %1458 = vmatprep.mubr.bf16.mxu1 %v561_v51  ;;  %v180_v59 = vpack.c.bf16 %v164_v49, %v164_v49  ;;  %v292_v11 = vld [vmem:[#allocation2 + $0x48] sm:$0x10]  ;;  %v298_v38 = vld [vmem:[#allocation2 + $0x58] sm:$0x10] }
  0x78   :  { %421 = vst [vmem:[#allocation2 + $0x18] sm:$0x1f] %v420_v4  ;;  %424 = vst [vmem:[#allocation2 + $0x20] sm:$0x1f] %v423_v21  ;;  %v99_v60 = vmul.f32 %v2891_v35, %v82_v45  ;;  %v295_v21 = vld [vmem:[#allocation2 + $0x50] sm:$0x10]  ;;  %v100_v51 = vmul.f32 %v2891_v35, %v83_v22 }
  0x79   :  { %1453 = vmatpush1.bf16.msra.mxu1 %v2597_v16  ;;  %1622 = vmatpush1.bf16.msra.mxu0 %v2598_v29  ;;  %v286_v16 = vld [vmem:[#allocation2 + $0x38] sm:$0x10]  ;;  %v388_v9 = vshrl.u32 %v180_v59, 16 }
  0x7a   :  { %1454 = vmatprep.subr.bf16.mxu1 %v2768_v1  ;;  %1623 = vmatprep.subr.bf16.mxu0 %v2768_v1  ;;  %v287_v20 = vsel %vm2882_vm5, 0, %v286_v16  ;;  %v149_v16 = vadd.f32 %v133_v62, %v99_v60  ;;  %v229_v60 = vld [vmem:[#allocation2 + $0x60] sm:$0x1]  ;;  %v2612_v62 = vld [vmem:[#allocation10 + $0x1a0] sm:$0xff]  }
  0x7b   :  { %288 = vst [vmem:[#allocation2 + $0x38] sm:$0x10] %v287_v20  ;;  %v2968_v29 = vld [vmem:[#allocation2 + $0x10] sm:$0xff]  ;;  %v390_v20 = vrot.slane %v388_v9, 7 }
  0x7c   :  { %v566_v37 = vshll.u32 %v2968_v29, 16  ;;  %v570_v53 = vshrl.u32 %v2968_v29, 16  ;;  %v759_v55 = vrot.slane %v2968_v29, 1  ;;  %v165_v26 = vmax.f32 %v149_v16, 0.0 }
  0x7d   :  { %1455 = vmatpush1.bf16.msra.mxu1 %v2599_v42  ;;  %1624 = vmatpush1.bf16.msra.mxu0 %v2600_v47  ;;  %v383_v42 = vrot.slane %v381_v33, 7  ;;  %v221_v33 = vsel %vm2872_vm3, 0, %v220_v5  ;;  %v301_v5 = vld [vmem:[#allocation2 + $0x60] sm:$0x10] }
  0x7e   :  { %1456 = vmatprep.subr.bf16.mxu1 %v2768_v1  ;;  %1625 = vmatprep.subr.bf16.mxu0 %v2768_v1  ;;  %v568_v46 = vrot.slane %v566_v37, 1  ;;  %v3005_v12 = vsel %vm755_vm9, %v757_v28, %v759_v55  ;;  %v226_v37 = vld [vmem:[#allocation2 + $0x58] sm:$0x1]  ;;  %222 = vst [vmem:[#allocation2 + $0x48] sm:$0x1] %v221_v33  ;;  %v3036_v49 = vld [vmem:[#allocation2 + $0x28] sm:$0xff] }
  0x7f   :  { %v2978_v47 = vld [vmem:[#allocation2 + $0x18] sm:$0xff]  ;;  %v386_v58 = vor.u32 %v384_v44, %v383_v42  ;;  %v2994_v3 = vld [vmem:[#allocation2 + $0x20] sm:$0xff]  ;;  %v224_v42 = vsel %vm2872_vm3, 0, %v223_v18  ;;  %v296_v44 = vsel %vm2882_vm5, 0, %v295_v21  ;;  %v302_v9 = vsel %vm2882_vm5, 0, %v301_v5 }
  0x80   :  { %v574_v54 = vshll.u32 %v2978_v47, 16  ;;  %v2988_v61 = vsel %vm549_vm10, %v564_v52, %v568_v46  ;;  %v761_v2 = vrot.slane %v2978_v47, 1  ;;  %v572_v6 = vor.u32 %v570_v53, %v568_v46  ;;  %225 = vst [vmem:[#allocation2 + $0x50] sm:$0x1] %v224_v42  ;;  %297 = vst [vmem:[#allocation2 + $0x50] sm:$0x10] %v296_v44 }
  0x81   :  { %1457 = vmatpush1.bf16.msra.mxu1 %v2601_v10  ;;  %1626 = vmatpush1.bf16.msra.mxu0 %v2602_v17  ;;  %v429_v4 = vsel %vm2928_vm8, %v386_v58, %v428_v48  ;;  %v391_v10 = vshll.u32 %v180_v59, 16  ;;  %v578_v13 = vshrl.u32 %v2978_v47, 16  ;;  %v218_v17 = vsel %vm2872_vm3, 0, %v217_v63  ;;  %v84_v48 = vld [vmem:[#allocation7 + $0x48] sm:$0xff]  ;;  %338 = vst [vmem:[#allocation2 + $0x50] sm:$0xff] %v2768_v1  ;;  %v2611_v58 = vld [vmem:[#allocation10 + $0x120] sm:$0xff]  }
  0x82   :  { %2464 = vmatprep.subr.bf16.mxu1 %v2768_v1  ;;  %1764 = vmatprep.subr.bf16.mxu0 %v2768_v1  ;;  %v3000_v7 = vrot.slane %v574_v54, 1  ;;  %430 = vst [vmem:[#allocation2 + $0x30] sm:$0x1f] %v429_v4  ;;  %v431_v15 = vld [vmem:[#allocation2 + $0x38] sm:$0x1f]  ;;  %v582_v19 = vshll.u32 %v2994_v3, 16  ;;  %v3047_v54 = vsel %vm755_vm9, %v759_v55, %v761_v2  ;;  %v101_v4 = vmul.f32 %v2891_v35, %v84_v48 }
  0x83   :  { %219 = vst [vmem:[#allocation2 + $0x40] sm:$0x1] %v218_v17  ;;  %v393_v32 = vor.u32 %v391_v10, %v390_v20  ;;  %v227_v46 = vsel %vm2872_vm3, 0, %v226_v37  ;;  %v118_v53 = vld [vmem:[#allocation8 + $0x48] sm:$0xff]  ;;  %v299_v59 = vsel %vm2882_vm5, 0, %v298_v38  ;;  %v763_v17 = vrot.slane %v2994_v3, 1 }
  0x84   :  { %1628 = vmatmul.mubr.bf16.vlgmr.msra.gmra.mrb[0].mxu0 %v758_v40  ;;  %1459 = vmatmul.mubr.bf16.vlgmr.msra.gmra.mrb[0].mxu1 %v2768_v1  ;;  %v3017_v28 = vsel %vm549_vm10, %v572_v6, %v3000_v7  ;;  %v181_v40 = vpack.c.bf16 %v165_v26, %v165_v26  ;;  %228 = vst [vmem:[#allocation2 + $0x58] sm:$0x1] %v227_v46  ;;  %300 = vst [vmem:[#allocation2 + $0x58] sm:$0x10] %v299_v59  ;;  %v586_v6 = vshrl.u32 %v2994_v3, 16  ;;  %v2613_v21 = vld [vmem:[#allocation10 + $0x128] sm:$0xff]  }
  0x85   :  { %1765 = vmatpush1.bf16.msra.mxu0 %v2603_v34  ;;  %1634 = vmatprep.mubr.bf16.mxu0 %v2968_v29  ;;  %v117_v34 = vld [vmem:[#allocation8 + $0x40] sm:$0xff]  ;;  %v432_v45 = vsel %vm2928_vm8, %v393_v32, %v431_v15  ;;  %v135_v55 = vmul.f32 %v2893_v36, %v118_v53  ;;  %303 = vst [vmem:[#allocation2 + $0x60] sm:$0x10] %v302_v9  ;;  %v85_v15 = vld [vmem:[#allocation7 + $0x50] sm:$0xff]  ;;  %v765_v33 = vrot.slane %v3036_v49, 1  ;;  %v86_v38 = vld [vmem:[#allocation7 + $0x58] sm:$0xff] }
  0x86   :  { %2480 = vmatpush1.bf16.msra.mxu1 %v2604_v41  ;;  %1465 = vmatprep.mubr.bf16.mxu1 %v2988_v61  ;;  %v293_v41 = vsel %vm2882_vm5, 0, %v292_v11  ;;  %433 = vst [vmem:[#allocation2 + $0x38] sm:$0x1f] %v432_v45  ;;  %v395_v50 = vshrl.u32 %v181_v40, 16  ;;  %v134_v52 = vmul.f32 %v2893_v36, %v117_v34  ;;  %v102_v18 = vmul.f32 %v2891_v35, %v85_v15  ;;  %v232_v20 = vld [vmem:[#allocation2 + $0x68] sm:$0x1] }
  0x87   :  { %1766 = vmatprep.subr.bf16.mxu0 %v2768_v1  ;;  %2465 = vmatprep.subr.bf16.mxu1 %v2768_v1  ;;  %294 = vst [vmem:[#allocation2 + $0x48] sm:$0x10] %v293_v41  ;;  %v304_v32 = vld [vmem:[#allocation2 + $0x68] sm:$0x10]  ;;  %v233_v34 = vsel %vm2872_vm3, 0, %v232_v20  ;;  %v594_v41 = vshrl.u32 %v3036_v49, 16  ;;  %v3095_v53 = vsel %vm755_vm9, %v761_v2, %v763_v17 }
  0x88   :  { %336 = vst [vmem:[#allocation2 + $0x48] sm:$0xff] %v2768_v1  ;;  %v397_v63 = vrot.slane %v395_v50, 7  ;;  %v150_v0 = vadd.f32 %v134_v52, %v100_v51  ;;  %v305_v37 = vsel %vm2882_vm5, 0, %v304_v32  ;;  %234 = vst [vmem:[#allocation2 + $0x68] sm:$0x1] %v233_v34  ;;  %v120_v44 = vld [vmem:[#allocation8 + $0x58] sm:$0xff]  ;;  %v103_v51 = vmul.f32 %v2891_v35, %v86_v38 }
  0x89   :  { %1767 = vmatpush1.bf16.msra.mxu0 %v2605_v56  ;;  %v580_v56 = vor.u32 %v578_v13, %v3000_v7  ;;  %v590_v7 = vshll.u32 %v3036_v49, 16  ;;  %306 = vst [vmem:[#allocation2 + $0x68] sm:$0x10] %v305_v37  ;;  %v3086_v45 = vld [vmem:[#allocation2 + $0x30] sm:$0xff]  ;;  %v2615_v46 = vld [vmem:[#allocation10 + $0x130] sm:$0xff]  }
  0x8a   :  { %1768 = vmatprep.subr.bf16.mxu0 %v2768_v1  ;;  %2481 = vmatpush1.bf16.msra.mxu1 %v2606_v57  ;;  %v584_v57 = vrot.slane %v582_v19, 1  ;;  %v434_v11 = vld [vmem:[#allocation2 + $0x40] sm:$0x1f]  ;;  %v166_v13 = vmax.f32 %v150_v0, 0.0  ;;  %v119_v19 = vld [vmem:[#allocation8 + $0x50] sm:$0xff]  ;;  %v598_v5 = vshll.u32 %v3086_v45, 16 }
  0x8b   :  { %2466 = vmatprep.subr.bf16.mxu1 %v2768_v1  ;;  %v136_v27 = vmul.f32 %v2893_v36, %v119_v19  ;;  %v235_v52 = vld [vmem:[#allocation2 + $0x70] sm:$0x1]  ;;  %v307_v59 = vld [vmem:[#allocation2 + $0x70] sm:$0x10]  ;;  %v238_v9 = vld [vmem:[#allocation2 + $0x78] sm:$0x1] }
  0x8c   :  { %1635 = vmatmul.mubr.bf16.gmra.mrb[4].mxu0 %v3005_v12  ;;  %1466 = vmatmul.mubr.bf16.gmra.mrb[4].mxu1 %v2963_v24  ;;  %v398_v24 = vshll.u32 %v181_v40, 16  ;;  %v3064_v16 = vsel %vm549_vm10, %v580_v56, %v584_v57  ;;  %v3081_v40 = vrot.slane %v590_v7, 1  ;;  %v3097_v56 = vld [vmem:[#allocation10 + $0x1b0] sm:$0xff]   ;;  %v3132_v32 = vld [vmem:[#allocation10 + $0x1b8] sm:$0xff]   ;;  %v310_v37 = vld [vmem:[#allocation2 + $0x78] sm:$0x10] }
  0x8d   :  { %1641 = vmatprep.mubr.bf16.mxu0 %v2978_v47  ;;  %1769 = vmatpush1.bf16.msra.mxu0 %v2607_v8  ;;  %v230_v8 = vsel %vm2872_vm3, 0, %v229_v60  ;;  %v87_v60 = vld [vmem:[#allocation7 + $0x60] sm:$0xff] }
  0x8e   :  { %1770 = vmatprep.subr.bf16.mxu0 %v2768_v1  ;;  %1472 = vmatprep.mubr.bf16.mxu1 %v3017_v28  ;;  %v400_v10 = vor.u32 %v398_v24, %v397_v63  ;;  %231 = vst [vmem:[#allocation2 + $0x60] sm:$0x1] %v230_v8  ;;  %v152_v24 = vadd.f32 %v136_v27, %v102_v18  ;;  %v121_v8 = vld [vmem:[#allocation8 + $0x60] sm:$0xff] }
  0x8f   :  { %2482 = vmatpush1.bf16.msra.mxu1 %v2608_v14  ;;  %v151_v14 = vadd.f32 %v135_v55, %v101_v4  ;;  %v236_v55 = vsel %vm2872_vm3, 0, %v235_v52  ;;  %v104_v15 = vmul.f32 %v2891_v35, %v87_v60  ;;  %v3129_v27 = vld [vmem:[#allocation2 + $0x38] sm:$0xff]  ;;  %v122_v52 = vld [vmem:[#allocation8 + $0x68] sm:$0xff] }
  0x90   :  { %2467 = vmatprep.subr.bf16.mxu1 %v2768_v1  ;;  %v435_v22 = vsel %vm2928_vm8, %v400_v10, %v434_v11  ;;  %v168_v4 = vmax.f32 %v152_v24, 0.0  ;;  %237 = vst [vmem:[#allocation2 + $0x70] sm:$0x1] %v236_v55  ;;  %v2617_v10 = vld [vmem:[#allocation10 + $0x138] sm:$0xff]   ;;  %v508_v24 = vld [vmem:[#allocation2 + $0x68] sm:$0x1f] }
  0x91   :  { %1771 = vmatpush1.bf16.msra.mxu0 %v2609_v25  ;;  %v182_v25 = vpack.c.bf16 %v166_v13, %v166_v13  ;;  %v167_v26 = vmax.f32 %v151_v14, 0.0  ;;  %436 = vst [vmem:[#allocation2 + $0x40] sm:$0x1f] %v435_v22  ;;  %v308_v14 = vsel %vm2882_vm5, 0, %v307_v59  ;;  %v239_v22 = vsel %vm2872_vm3, 0, %v238_v9 }
  0x92   :  { %1772 = vmatprep.subr.bf16.mxu0 %v2768_v1  ;;  %v184_v13 = vpack.c.bf16 %v168_v4, %v168_v4  ;;  %309 = vst [vmem:[#allocation2 + $0x70] sm:$0x10] %v308_v14  ;;  %240 = vst [vmem:[#allocation2 + $0x78] sm:$0x1] %v239_v22  ;;  %v3149_v4 = vld [vmem:[#allocation10 + $0x1c0] sm:$0xff]   ;;  %v123_v14 = vld [vmem:[#allocation8 + $0x70] sm:$0xff] }
  0x93   :  { %2483 = vmatpush1.bf16.msra.mxu1 %v2610_v39  ;;  %v588_v39 = vor.u32 %v586_v6, %v584_v57  ;;  %v438_v42 = vshrl.u32 %v182_v25, 16  ;;  %v441_v48 = vshll.u32 %v182_v25, 16  ;;  %v183_v50 = vpack.c.bf16 %v167_v26, %v167_v26  ;;  %v244_v22 = vld [vmem:[#allocation2 + $0x88] sm:$0x1] }
  0x94   :  { %1642 = vmatmul.mubr.bf16.gmra.mrb[8].mxu0 %v3047_v54  ;;  %2468 = vmatprep.subr.bf16.mxu1 %v2768_v1  ;;  %v3126_v25 = vsel %vm755_vm9, %v763_v17, %v765_v33  ;;  %v767_v26 = vrot.slane %v3086_v45, 1  ;;  %v452_v38 = vshrl.u32 %v184_v13, 16  ;;  %v455_v17 = vshll.u32 %v184_v13, 16  ;;  %v89_v13 = vld [vmem:[#allocation7 + $0x70] sm:$0xff] }
  0x95   :  { %1648 = vmatprep.mubr.bf16.mxu0 %v2994_v3  ;;  %1773 = vmatpush1.bf16.msra.mxu0 %v2611_v58  ;;  %v440_v57 = vrot.slane %v438_v42, 7  ;;  %v137_v58 = vmul.f32 %v2893_v36, %v120_v44  ;;  %v445_v63 = vshrl.u32 %v183_v50, 16  ;;  %v448_v0 = vshll.u32 %v183_v50, 16  ;;  %v505_v19 = vld [vmem:[#allocation2 + $0x60] sm:$0x1f] }
  0x96   :  { %1473 = vmatmul.mubr.bf16.gmra.mrb[8].mxu1 %v2968_v29  ;;  %1774 = vmatprep.subr.bf16.mxu0 %v2768_v1  ;;  %v3084_v29 = vld [vmem:[#allocation10 + $0x1a8] sm:$0xff]   ;;  %v3105_v2 = vsel %vm549_vm10, %v588_v39, %v3081_v40  ;;  %v596_v44 = vor.u32 %v594_v41, %v3081_v40  ;;  %v606_v40 = vshll.u32 %v3129_v27, 16  ;;  %v311_v41 = vsel %vm2882_vm5, 0, %v310_v37 }
  0x97   :  { %1479 = vmatprep.mubr.bf16.mxu1 %v3064_v16  ;;  %2484 = vmatpush1.bf16.msra.mxu1 %v2612_v62  ;;  %v502_v62 = vld [vmem:[#allocation2 + $0x58] sm:$0x1f]  ;;  %v443_v6 = vor.u32 %v441_v48, %v440_v57  ;;  %v153_v7 = vadd.f32 %v137_v58, %v103_v51  ;;  %v447_v11 = vrot.slane %v445_v63, 7  ;;  %v602_v48 = vshrl.u32 %v3086_v45, 16  ;;  %v88_v51 = vld [vmem:[#allocation7 + $0x68] sm:$0xff] }
  0x98   :  { %2469 = vmatprep.subr.bf16.mxu1 %v2768_v1  ;;  %v241_v57 = vld [vmem:[#allocation2 + $0x80] sm:$0x1]  ;;  %v454_v58 = vrot.slane %v452_v38, 7  ;;  %v313_v63 = vld [vmem:[#allocation2 + $0x80] sm:$0x10]  ;;  %v3165_v37 = vrot.slane %v606_v40, 1 }
  0x99   :  { %1775 = vmatpush1.bf16.msra.mxu0 %v2613_v21  ;;  %v503_v18 = vsel %vm2928_vm8, %v443_v6, %v502_v62  ;;  %v169_v20 = vmax.f32 %v153_v7, 0.0  ;;  %v138_v21 = vmul.f32 %v2893_v36, %v121_v8  ;;  %v450_v34 = vor.u32 %v448_v0, %v447_v11  ;;  %312 = vst [vmem:[#allocation2 + $0x78] sm:$0x10] %v311_v41  ;;  %v511_v9 = vld [vmem:[#allocation2 + $0x70] sm:$0x1f]  ;;  %v3168_v38 = vld [vmem:[#allocation10 + $0x1c8] sm:$0xff]  }
  0x9a   :  { %1776 = vmatprep.subr.bf16.mxu0 %v2768_v1  ;;  %504 = vst [vmem:[#allocation2 + $0x58] sm:$0x1f] %v503_v18  ;;  %v105_v0 = vmul.f32 %v2891_v35, %v88_v51  ;;  %v457_v55 = vor.u32 %v455_v17, %v454_v58  ;;  %v139_v7 = vmul.f32 %v2893_v36, %v122_v52  ;;  %v314_v11 = vsel %vm2882_vm5, 0, %v313_v63  ;;  %v2623_v17 = vld [vmem:[#allocation10 + $0x150] sm:$0xff]   ;;  %v3187_v52 = vld [vmem:[#allocation2 + $0x40] sm:$0xff]  ;;  %v124_v40 = vld [vmem:[#allocation8 + $0x78] sm:$0xff] }
  0x9b   :  { %2485 = vmatpush1.bf16.msra.mxu1 %v3084_v29  ;;  %v185_v39 = vpack.c.bf16 %v169_v20, %v169_v20  ;;  %v154_v42 = vadd.f32 %v138_v21, %v104_v15  ;;  %v506_v50 = vsel %vm2928_vm8, %v450_v34, %v505_v19  ;;  %v2621_v15 = vld [vmem:[#allocation10 + $0x148] sm:$0xff]   ;;  %315 = vst [vmem:[#allocation2 + $0x80] sm:$0x10] %v314_v11  ;;  %v769_v51 = vrot.slane %v3129_v27, 1  ;;  %v319_v11 = vld [vmem:[#allocation2 + $0x90] sm:$0x10] }
  0x9c   :  { %1649 = vmatmul.mubr.bf16.gmra.mrb[12].mxu0 %v3095_v53  ;;  %2470 = vmatprep.subr.bf16.mxu1 %v2768_v1  ;;  %507 = vst [vmem:[#allocation2 + $0x60] sm:$0x1f] %v506_v50  ;;  %v509_v18 = vsel %vm2928_vm8, %v457_v55, %v508_v24  ;;  %v316_v50 = vld [vmem:[#allocation2 + $0x88] sm:$0x10]  ;;  %v3184_v24 = vsel %vm755_vm9, %v765_v33, %v767_v26  ;;  %v610_v58 = vshrl.u32 %v3129_v27, 16 }
  0x9d   :  { %1655 = vmatprep.mubr.bf16.mxu0 %v3036_v49  ;;  %1777 = vmatpush1.bf16.msra.mxu0 %v2615_v46  ;;  %v600_v46 = vrot.slane %v598_v5, 1  ;;  %v459_v59 = vshrl.u32 %v185_v39, 16  ;;  %v462_v60 = vshll.u32 %v185_v39, 16  ;;  %v170_v62 = vmax.f32 %v154_v42, 0.0  ;;  %510 = vst [vmem:[#allocation2 + $0x68] sm:$0x1f] %v509_v18 }
  0x9e   :  { %1480 = vmatmul.mubr.bf16.gmra.mrb[12].mxu1 %v2978_v47  ;;  %1778 = vmatprep.subr.bf16.mxu0 %v2768_v1  ;;  %v2619_v47 = vld [vmem:[#allocation10 + $0x140] sm:$0xff]   ;;  %v247_v33 = vld [vmem:[#allocation2 + $0x90] sm:$0x1] }
  0x9f   :  { %1486 = vmatprep.mubr.bf16.mxu1 %v3105_v2  ;;  %2486 = vmatpush1.bf16.msra.mxu1 %v3097_v56  ;;  %v461_v5 = vrot.slane %v459_v59, 7  ;;  %v186_v6 = vpack.c.bf16 %v170_v62, %v170_v62  ;;  %v3154_v8 = vsel %vm549_vm10, %v596_v44, %v600_v46  ;;  %v604_v34 = vor.u32 %v602_v48, %v600_v46  ;;  %v3190_v59 = vld [vmem:[#allocation2] sm:$0xff] }
  0xa0   :  { %2471 = vmatprep.subr.bf16.mxu1 %v2768_v1  ;;  %v140_v44 = vmul.f32 %v2893_v36, %v123_v14  ;;  %v245_v48 = vsel %vm2872_vm3, 0, %v244_v22  ;;  %v248_v18 = vsel %vm2872_vm3, 0, %v247_v33  ;;  %v771_v33 = vrot.slane %v3187_v52, 1 }
  0xa1   :  { %1779 = vmatpush1.bf16.msra.mxu0 %v2617_v10  ;;  %v242_v10 = vsel %vm2872_vm3, 0, %v241_v57  ;;  %v464_v19 = vor.u32 %v462_v60, %v461_v5  ;;  %v466_v20 = vshrl.u32 %v186_v6, 16  ;;  %v469_v21 = vshll.u32 %v186_v6, 16  ;;  %246 = vst [vmem:[#allocation2 + $0x88] sm:$0x1] %v245_v48 }
  0xa2   :  { %1780 = vmatprep.subr.bf16.mxu0 %v2768_v1  ;;  %243 = vst [vmem:[#allocation2 + $0x80] sm:$0x1] %v242_v10  ;;  %v514_v60 = vld [vmem:[#allocation2 + $0x78] sm:$0x1f]  ;;  %v3195_v41 = vsel %vm549_vm10, %v604_v34, %v3165_v37  ;;  %v317_v5 = vsel %vm2882_vm5, 0, %v316_v50  ;;  %v614_v6 = vshll.u32 %v3187_v52, 16  ;;  %v3291_v31 = vsel %vm755_vm9, %v771_v33, %v2937_v43 }
  0xa3   :  { %2487 = vmatpush1.bf16.msra.mxu1 %v3132_v32  ;;  %v512_v39 = vsel %vm2928_vm8, %v464_v19, %v511_v9  ;;  %v468_v42 = vrot.slane %v466_v20, 7  ;;  %318 = vst [vmem:[#allocation2 + $0x88] sm:$0x10] %v317_v5  ;;  %v250_v19 = vld [vmem:[#allocation2 + $0x98] sm:$0x1]  ;;  %v2629_v5 = vld [vmem:[#allocation10 + $0x168] sm:$0xff]  }
  0xa4   :  { %1656 = vmatmul.mubr.bf16.gmra.mrb[16].mxu0 %v3126_v25  ;;  %2472 = vmatprep.subr.bf16.mxu1 %v2768_v1  ;;  %513 = vst [vmem:[#allocation2 + $0x70] sm:$0x1f] %v512_v39  ;;  %249 = vst [vmem:[#allocation2 + $0x90] sm:$0x1] %v248_v18  ;;  %v251_v34 = vsel %vm2872_vm3, 0, %v250_v19  ;;  %v3264_v18 = vsel %vm755_vm9, %v769_v51, %v771_v33 }
  0xa5   :  { %1662 = vmatprep.mubr.bf16.mxu0 %v3086_v45  ;;  %1781 = vmatpush1.bf16.msra.mxu0 %v2619_v47  ;;  %v155_v47 = vadd.f32 %v139_v7, %v105_v0  ;;  %v471_v57 = vor.u32 %v469_v21, %v468_v42  ;;  %v3198_v0 = vld [vmem:[#allocation10 + $0x1d0] sm:$0xff]   ;;  %252 = vst [vmem:[#allocation2 + $0x98] sm:$0x1] %v251_v34  ;;  %v322_v42 = vld [vmem:[#allocation2 + $0x98] sm:$0x10] }
  0xa6   :  { %1487 = vmatmul.mubr.bf16.gmra.mrb[16].mxu1 %v2994_v3  ;;  %1782 = vmatprep.subr.bf16.mxu0 %v2768_v1  ;;  %v106_v3 = vmul.f32 %v2891_v35, %v89_v13  ;;  %v2625_v13 = vld [vmem:[#allocation10 + $0x158] sm:$0xff]  }
  0xa7   :  { %1493 = vmatprep.mubr.bf16.mxu1 %v3154_v8  ;;  %2488 = vmatpush1.bf16.msra.mxu1 %v3149_v4  ;;  %v171_v46 = vmax.f32 %v155_v47, 0.0  ;;  %v515_v55 = vsel %vm2928_vm8, %v471_v57, %v514_v60  ;;  %v612_v47 = vor.u32 %v610_v58, %v3165_v37  ;;  %v3236_v57 = vld [vmem:[#allocation10 + $0x1e0] sm:$0xff]   ;;  %v323_v60 = vsel %vm2882_vm5, 0, %v322_v42 }
  0xa8   :  { %2473 = vmatprep.subr.bf16.mxu1 %v2768_v1  ;;  %v90_v1 = vld [vmem:[#allocation7 + $0x78] sm:$0xff]  ;;  %v156_v63 = vadd.f32 %v140_v44, %v106_v3  ;;  %516 = vst [vmem:[#allocation2 + $0x78] sm:$0x1f] %v515_v55  ;;  %v618_v3 = vshrl.u32 %v3187_v52, 16  ;;  %324 = vst [vmem:[#allocation2 + $0x98] sm:$0x10] %v323_v60 }
  0xa9   :  { %1783 = vmatpush1.bf16.msra.mxu0 %v2621_v15  ;;  %v187_v62 = vpack.c.bf16 %v171_v46, %v171_v46  ;;  %v107_v10 = vmul.f32 %v2891_v35, %v90_v1  ;;  %v141_v15 = vmul.f32 %v2893_v36, %v124_v40  ;;  %v3216_v35 = vld [vmem:[#allocation10 + $0x1d8] sm:$0xff]   ;;  %v320_v36 = vsel %vm2882_vm5, 0, %v319_v11  ;;  %v517_v39 = vld [vmem:[#allocation2 + $0x80] sm:$0x1f]  ;;  %v2627_v46 = vld [vmem:[#allocation10 + $0x160] sm:$0xff]   ;;  %340 = vst [vmem:[#allocation2 + $0x98] sm:$0xff] %v3190_v59 }
  0xaa   :  { %1784 = vmatprep.subr.bf16.mxu0 %v3190_v59  ;;  %v172_v9 = vmax.f32 %v156_v63, 0.0  ;;  %321 = vst [vmem:[#allocation2 + $0x90] sm:$0x10] %v320_v36  ;;  %v520_v40 = vld [vmem:[#allocation2 + $0x88] sm:$0x1f] }
  0xab   :  { %2489 = vmatpush1.bf16.msra.mxu1 %v3168_v38  ;;  %v473_v7 = vshrl.u32 %v187_v62, 16  ;;  %v476_v14 = vshll.u32 %v187_v62, 16  ;;  %v157_v22 = vadd.f32 %v141_v15, %v107_v10  ;;  %v325_v62 = vld [vmem:[#allocation2 + $0xa0] sm:$0x10]  ;;  %v3320_v60 = vld [vmem:[#allocation2 + $0x68] sm:$0xff] }
  0xac   :  { %1663 = vmatmul.mubr.bf16.gmra.mrb[20].mxu0 %v3184_v24  ;;  %2474 = vmatprep.subr.bf16.mxu1 %v3190_v59  ;;  %v188_v21 = vpack.c.bf16 %v172_v9, %v172_v9  ;;  %v3256_v10 = vld [vmem:[#allocation10 + $0x1e8] sm:$0xff]   ;;  %v654_v33 = vshll.u32 %v3320_v60, 16 }
  0xad   :  { %1669 = vmatprep.mubr.bf16.mxu0 %v3129_v27  ;;  %1785 = vmatpush1.bf16.msra.mxu0 %v2623_v17  ;;  %v475_v20 = vrot.slane %v473_v7, 7  ;;  %v616_v17 = vrot.slane %v614_v6, 1  ;;  %v173_v58 = vmax.f32 %v157_v22, 0.0  ;;  %v3269_v22 = vld [vmem:[#allocation10 + $0x1f0] sm:$0xff]  }
  0xae   :  { %1494 = vmatmul.mubr.bf16.gmra.mrb[20].mxu1 %v3036_v49  ;;  %1786 = vmatprep.subr.bf16.mxu0 %v3190_v59  ;;  %v3227_v49 = vsel %vm755_vm9, %v767_v26, %v769_v51  ;;  %v480_v48 = vshrl.u32 %v188_v21, 16  ;;  %v483_v50 = vshll.u32 %v188_v21, 16  ;;  %v253_v26 = vld [vmem:[#allocation2 + $0xa0] sm:$0x1]  ;;  %v2633_v51 = vld [vmem:[#allocation10 + $0x178] sm:$0xff]  }
  0xaf   :  { %1500 = vmatprep.mubr.bf16.mxu1 %v3195_v41  ;;  %2490 = vmatpush1.bf16.msra.mxu1 %v3198_v0  ;;  %v478_v44 = vor.u32 %v476_v14, %v475_v20  ;;  %v3242_v63 = vsel %vm549_vm10, %v612_v47, %v616_v17  ;;  %v189_v6 = vpack.c.bf16 %v173_v58, %v173_v58  ;;  %v254_v7 = vsel %vm2872_vm3, 0, %v253_v26  ;;  %v2631_v20 = vld [vmem:[#allocation10 + $0x170] sm:$0xff]   ;;  %v3284_v47 = vld [vmem:[#allocation10 + $0x1f8] sm:$0xff]  }
  0xb0   :  { %2475 = vmatprep.subr.bf16.mxu1 %v3190_v59  ;;  %v482_v1 = vrot.slane %v480_v48, 7  ;;  %255 = vst [vmem:[#allocation2 + $0xa0] sm:$0x1] %v254_v7  ;;  %v620_v14 = vor.u32 %v618_v3, %v616_v17  ;;  %v3287_v17 = vld [vmem:[#allocation10 + $0x200] sm:$0xff]  }
  0xb1   :  { %1787 = vmatpush1.bf16.msra.mxu0 %v2625_v13  ;;  %v518_v37 = vsel %vm2928_vm8, %v478_v44, %v517_v39  ;;  %v487_v11 = vshrl.u32 %v189_v6, 16  ;;  %v490_v13 = vshll.u32 %v189_v6, 16  ;;  %v523_v15 = vld [vmem:[#allocation2 + $0x90] sm:$0x1f]  ;;  %v3293_v39 = vld [vmem:[#allocation2 + $0x58] sm:$0xff]  ;;  %v3303_v44 = vld [vmem:[#allocation2 + $0x60] sm:$0xff] }
  0xb2   :  { %1788 = vmatprep.subr.bf16.mxu0 %v3190_v59  ;;  %519 = vst [vmem:[#allocation2 + $0x80] sm:$0x1f] %v518_v37  ;;  %v485_v55 = vor.u32 %v483_v50, %v482_v1  ;;  %v3274_v36 = vsel %vm549_vm10, %v620_v14, %v2937_v43  ;;  %v638_v42 = vshll.u32 %v3293_v39, 16  ;;  %v642_v48 = vshrl.u32 %v3293_v39, 16 }
  0xb3   :  { %2491 = vmatpush1.bf16.msra.mxu1 %v3216_v35  ;;  %v489_v19 = vrot.slane %v487_v11, 7  ;;  %v646_v50 = vshll.u32 %v3303_v44, 16  ;;  %v777_v26 = vrot.slane %v3293_v39, 1  ;;  %v656_v6 = vrot.slane %v654_v33, 1 }
  0xb4   :  { %1670 = vmatmul.mubr.bf16.gmra.mrb[24].mxu0 %v3227_v49  ;;  %2476 = vmatprep.subr.bf16.mxu1 %v3190_v59  ;;  %v521_v9 = vsel %vm2928_vm8, %v485_v55, %v520_v40  ;;  %v640_v3 = vrot.slane %v638_v42, 1  ;;  %v650_v40 = vshrl.u32 %v3303_v44, 16  ;;  %v779_v55 = vrot.slane %v3303_v44, 1 }
  0xb5   :  { %1676 = vmatprep.mubr.bf16.mxu0 %v3187_v52  ;;  %1789 = vmatpush1.bf16.msra.mxu0 %v2627_v46  ;;  %522 = vst [vmem:[#allocation2 + $0x88] sm:$0x1f] %v521_v9  ;;  %v492_v21 = vor.u32 %v490_v13, %v489_v19  ;;  %v648_v1 = vrot.slane %v646_v50, 1  ;;  %v3318_v58 = vsel %vm755_vm9, %v2937_v43, %v777_v26  ;;  %v3335_v9 = vld [vmem:[#allocation2 + $0x70] sm:$0xff]  ;;  %v658_v13 = vshrl.u32 %v3320_v60, 16 }
  0xb6   :  { %1501 = vmatmul.mubr.bf16.gmra.mrb[24].mxu1 %v3086_v45  ;;  %1790 = vmatprep.subr.bf16.mxu0 %v3190_v59  ;;  %v326_v45 = vsel %vm2882_vm5, 0, %v325_v62  ;;  %v3308_v46 = vsel %vm549_vm10, %v2937_v43, %v640_v3  ;;  %v644_v37 = vor.u32 %v642_v48, %v640_v3  ;;  %v3333_v7 = vsel %vm755_vm9, %v777_v26, %v779_v55 }
  0xb7   :  { %1507 = vmatprep.mubr.bf16.mxu1 %v3242_v63  ;;  %2492 = vmatpush1.bf16.msra.mxu1 %v3236_v57  ;;  %327 = vst [vmem:[#allocation2 + $0xa0] sm:$0x10] %v326_v45  ;;  %v524_v34 = vsel %vm2928_vm8, %v492_v21, %v523_v15  ;;  %v662_v45 = vshll.u32 %v3335_v9, 16  ;;  %v781_v14 = vrot.slane %v3320_v60, 1  ;;  %v660_v15 = vor.u32 %v658_v13, %v656_v6  ;;  %v3350_v21 = vld [vmem:[#allocation2 + $0x78] sm:$0xff] }
  0xb8   :  { %2477 = vmatprep.subr.bf16.mxu1 %v3190_v59  ;;  %342 = vst [vmem:[#allocation2 + $0xa0] sm:$0xff] %v3190_v59  ;;  %525 = vst [vmem:[#allocation2 + $0x90] sm:$0x1f] %v524_v34  ;;  %v3324_v62 = vsel %vm549_vm10, %v644_v37, %v648_v1  ;;  %v666_v34 = vshrl.u32 %v3335_v9, 16  ;;  %v670_v42 = vshll.u32 %v3350_v21, 16  ;;  %v783_v3 = vrot.slane %v3335_v9, 1 }
  0xb9   :  { %1791 = vmatpush1.bf16.msra.mxu0 %v2629_v5  ;;  %v652_v5 = vor.u32 %v650_v40, %v648_v1  ;;  %v664_v19 = vrot.slane %v662_v45, 1  ;;  %v3365_v37 = vld [vmem:[#allocation2 + $0x80] sm:$0xff]  ;;  %v674_v40 = vshrl.u32 %v3350_v21, 16 }
  0xba   :  { %1792 = vmatprep.subr.bf16.mxu0 %v3190_v59  ;;  %v672_v50 = vrot.slane %v670_v42, 1  ;;  %v3363_v26 = vsel %vm755_vm9, %v781_v14, %v783_v3  ;;  %3739 = vst [vmem:[#allocation18_spill] sm:$0xff] %v3365_v37  ;;  %v678_v33 = vshll.u32 %v3365_v37, 16 }
  0xbb   :  { %2493 = vmatpush1.bf16.msra.mxu1 %v3256_v10  ;;  %v3339_v11 = vsel %vm549_vm10, %v652_v5, %v656_v6  ;;  %v668_v48 = vor.u32 %v666_v34, %v664_v19  ;;  %3738 = vst [vmem:[#allocation17_spill] sm:$0xff] %v3363_v26  ;;  %v787_v34 = vrot.slane %v3365_v37, 1 }
  0xbc   :  { %1677 = vmatmul.mubr.bf16.gmra.mrb[28].mxu0 %v3264_v18  ;;  %2478 = vmatprep.subr.bf16.mxu1 %v3190_v59  ;;  %v676_v5 = vor.u32 %v674_v40, %v672_v50  ;;  %v680_v6 = vrot.slane %v678_v33, 1  ;;  %v3380_v45 = vld [vmem:[#allocation2 + $0x88] sm:$0xff] }
  0xbd   :  { %1683 = vmatprep.mubr.bf16.mxu0 %v3190_v59  ;;  %1793 = vmatpush1.bf16.msra.mxu0 %v2631_v20  ;;  %v3348_v20 = vsel %vm755_vm9, %v779_v55, %v781_v14  ;;  %v3369_v1 = vsel %vm549_vm10, %v668_v48, %v672_v50  ;;  %v785_v55 = vrot.slane %v3350_v21, 1  ;;  %v690_v33 = vshrl.u32 %v3380_v45, 16 }
  0xbe   :  { %1508 = vmatmul.mubr.bf16.gmra.mrb[28].mxu1 %v3129_v27  ;;  %1794 = vmatprep.subr.bf16.mxu0 %v3190_v59  ;;  %3737 = vst [vmem:[#allocation16_spill] sm:$0xff] %v3348_v20  ;;  %v3384_v14 = vsel %vm549_vm10, %v676_v5, %v680_v6 }
  0xbf   :  { %1514 = vmatprep.mubr.bf16.mxu1 %v3274_v36  ;;  %2494 = vmatpush1.bf16.msra.mxu1 %v3269_v22  ;;  %v3378_v13 = vsel %vm755_vm9, %v783_v3, %v785_v55  ;;  %v3393_v48 = vsel %vm755_vm9, %v785_v55, %v787_v34  ;;  %v3395_v50 = vld [vmem:[#allocation2 + $0x90] sm:$0xff] }
  0xc0   :  { %2479 = vmatprep.subr.bf16.mxu1 %v3190_v59  ;;  %3740 = vst [vmem:[#allocation19_spill] sm:$0xff] %v3378_v13  ;;  %3741 = vst [vmem:[#allocation20_spill] sm:$0xff] %v3393_v48  ;;  %v694_v5 = vshll.u32 %v3395_v50, 16 }
  0xc1   :  { %1795 = vmatpush1.bf16.msra.mxu0 %v2633_v51  ;;  %v3354_v51 = vsel %vm549_vm10, %v660_v15, %v664_v19  ;;  %v682_v15 = vshrl.u32 %v3365_v37, 16  ;;  %v686_v19 = vshll.u32 %v3380_v45, 16 }
  0xc2   :  { %1933 = vmatprep.subr.bf16.mxu0 %v3190_v59 }
  0xc3   :  { %2495 = vmatpush1.bf16.msra.mxu1 %v3284_v47  ;;  %v684_v42 = vor.u32 %v682_v15, %v680_v6  ;;  %v688_v3 = vrot.slane %v686_v19, 1  ;;  %v696_v6 = vrot.slane %v694_v5, 1 }
  0xc4   :  { %1684 = vmatmul.mubr.bf16.gmra.mrb[32].mxu0 %v3291_v31  ;;  %2408 = vmatprep.subr.bf16.mxu1 %v3287_v17 }
  0xc5   :  { %1689 = vmatprep.mubr.bf16.mxu0 %v3190_v59  ;;  %v3399_v40 = vsel %vm549_vm10, %v684_v42, %v688_v3  ;;  %v692_v55 = vor.u32 %v690_v33, %v688_v3  ;;  %v698_v42 = vshrl.u32 %v3395_v50, 16 }
  0xc6   :  { %1515 = vmatmul.mubr.bf16.gmra.mrb[32].mxu1 %v3187_v52 }
  0xc7   :  { %1520 = vmatprep.mubr.bf16.mxu1 %v2937_v43  ;;  %v3412_v19 = vsel %vm549_vm10, %v692_v55, %v696_v6  ;;  %v700_v3 = vor.u32 %v698_v42, %v696_v6  ;;  %v706_v55 = vshrl.u32 %v3190_v59, 16 }
  0xcc   :  { %1690 = vmatmul.mubr.bf16.gmra.mrb[36].mxu0 %v2937_v43 }
  0xcd   :  { %1695 = vmatprep.mubr.bf16.mxu0 %v3293_v39 }
  0xce   :  { %1521 = vmatmul.mubr.bf16.gmra.mrb[36].mxu1 %v3190_v59 }
  0xcf   :  { %1526 = vmatprep.mubr.bf16.mxu1 %v3308_v46 }
  0xd4   :  { %1696 = vmatmul.mubr.bf16.gmra.mrb[40].mxu0 %v3318_v58 }
  0xd5   :  { %1702 = vmatprep.mubr.bf16.mxu0 %v3303_v44 }
  0xd6   :  { %1527 = vmatmul.mubr.bf16.gmra.mrb[40].mxu1 %v3190_v59 }
  0xd7   :  { %1533 = vmatprep.mubr.bf16.mxu1 %v3324_v62 }
  0xdc   :  { %1703 = vmatmul.mubr.bf16.gmra.mrb[44].mxu0 %v3333_v7 }
  0xdd   :  { %1709 = vmatprep.mubr.bf16.mxu0 %v3320_v60 }
  0xde   :  { %1534 = vmatmul.mubr.bf16.gmra.mrb[44].mxu1 %v3293_v39 }
  0xdf   :  { %1540 = vmatprep.mubr.bf16.mxu1 %v3339_v11 }
  0xe4   :  { %1710 = vmatmul.mubr.bf16.gmra.mrb[48].mxu0 %v3348_v20  ;;  %v328_v20 = vld [vmem:[#allocation2 + $0xa8] sm:$0x10] }
  0xe5   :  { %1716 = vmatprep.mubr.bf16.mxu0 %v3335_v9 }
  0xe6   :  { %1541 = vmatmul.mubr.bf16.gmra.mrb[48].mxu1 %v3303_v44 }
  0xe7   :  { %1547 = vmatprep.mubr.bf16.mxu1 %v3354_v51 }
  0xec   :  { %1717 = vmatmul.mubr.bf16.gmra.mrb[52].mxu0 %v3363_v26  ;;  %v791_v26 = vrot.slane %v3395_v50, 1 }
  0xed   :  { %1723 = vmatprep.mubr.bf16.mxu0 %v3350_v21 }
  0xee   :  { %1548 = vmatmul.mubr.bf16.gmra.mrb[52].mxu1 %v3320_v60 }
  0xef   :  { %1554 = vmatprep.mubr.bf16.mxu1 %v3369_v1 }
  0xf4   :  { %1724 = vmatmul.mubr.bf16.gmra.mrb[56].mxu0 %v3378_v13  ;;  %v789_v13 = vrot.slane %v3380_v45, 1 }
  0xf5   :  { %1730 = vmatprep.mubr.bf16.mxu0 %v3365_v37 }
  0xf6   :  { %1555 = vmatmul.mubr.bf16.gmra.mrb[56].mxu1 %v3335_v9  ;;  %v3408_v15 = vsel %vm755_vm9, %v787_v34, %v789_v13  ;;  %v3421_v33 = vsel %vm755_vm9, %v789_v13, %v791_v26  ;;  %v329_v13 = vsel %vm2882_vm5, 0, %v328_v20  ;;  %v331_v20 = vld [vmem:[#allocation2 + $0xb0] sm:$0x10] }
  0xf7   :  { %1561 = vmatprep.mubr.bf16.mxu1 %v3384_v14  ;;  %3742 = vst [vmem:[#allocation21_spill] sm:$0xff] %v3408_v15  ;;  %330 = vst [vmem:[#allocation2 + $0xa8] sm:$0x10] %v329_v13  ;;  %v332_v13 = vsel %vm2882_vm5, 0, %v331_v20 }
  0xf8   :  { %333 = vst [vmem:[#allocation2 + $0xb0] sm:$0x10] %v332_v13  ;;  %v3743_v13 = vld [vmem:[#allocation18_spill] sm:$0xff] }
  0xfc   :  { %1731 = vmatmul.mubr.bf16.gmra.mrb[60].mxu0 %v3393_v48  ;;  %v702_v48 = vshll.u32 %v3190_v59, 16 }
  0xfd   :  { %1737 = vmatprep.mubr.bf16.mxu0 %v3380_v45 }
  0xfe   :  { %1562 = vmatmul.mubr.bf16.gmra.mrb[60].mxu1 %v3350_v21  ;;  %v704_v34 = vrot.slane %v702_v48, 1 }
  0xff   :  { %1568 = vmatprep.mubr.bf16.mxu1 %v3399_v40 }
 0x100   :  { %v3425_v5 = vsel %vm549_vm10, %v700_v3, %v704_v34  ;;  %v708_v6 = vor.u32 %v706_v55, %v704_v34  ;;  %v259_v3 = vld [vmem:[#allocation2 + $0xb0] sm:$0x1]  ;;  %v2640_v55 = vld [vmem:[#allocation10 + $0x228] sm:$0xff]  }
 0x104   :  { %1738 = vmatmul.mubr.bf16.gmra.mrb[64].mxu0 %v3408_v15  ;;  %v256_v15 = vld [vmem:[#allocation2 + $0xa8] sm:$0x1] }
 0x105   :  { %1744 = vmatprep.mubr.bf16.mxu0 %v3395_v50  ;;  %v257_v48 = vsel %vm2872_vm3, 0, %v256_v15  ;;  %v3445_v15 = vsel %vm549_vm10, %v708_v6, %v704_v34  ;;  %v2647_v34 = vld [vmem:[#allocation10 + $0x198] sm:$0xff]   ;;  %v2648_v6 = vld [vmem:[#allocation10 + $0x1a0] sm:$0xff]  }
 0x106   :  { %1569 = vmatmul.mubr.bf16.gmra.mrb[64].mxu1 %v3365_v37  ;;  %v3430_v37 = vrot.slane %v3190_v59, 1  ;;  %258 = vst [vmem:[#allocation2 + $0xa8] sm:$0x1] %v257_v48  ;;  %v260_v48 = vsel %vm2872_vm3, 0, %v259_v3  ;;  %v2642_v3 = vld [vmem:[#allocation10 + $0x238] sm:$0xff]  }
 0x107   :  { %1575 = vmatprep.mubr.bf16.mxu1 %v3412_v19  ;;  %343 = vst [vmem:[#allocation2 + $0xa8] sm:$0xff] %v3190_v59  ;;  %261 = vst [vmem:[#allocation2 + $0xb0] sm:$0x1] %v260_v48 }
 0x108   :  { %v3441_v42 = vsel %vm755_vm9, %v791_v26, %v3430_v37  ;;  %344 = vst [vmem:[#allocation2 + $0xb0] sm:$0xff] %v3190_v59  ;;  %v2645_v26 = vld [vmem:[#allocation10 + $0x188] sm:$0xff]  }
 0x10c   :  { %1745 = vmatmul.mubr.bf16.gmra.mrb[68].mxu0 %v3421_v33 }
 0x10d   :  { %1751 = vmatprep.mubr.bf16.mxu0 %v3190_v59 }
 0x10e   :  { %1576 = vmatmul.mubr.bf16.gmra.mrb[68].mxu1 %v3380_v45 }
 0x10f   :  { %1582 = vmatprep.mubr.bf16.mxu1 %v3425_v5 }
 0x114   :  { %1752 = vmatmul.mubr.bf16.gmra.mrb[72].mxu0 %v3441_v42 }
 0x115   :  { %1757 = vmatprep.mubr.bf16.mxu0 %v3190_v59 }
 0x116   :  { %1583 = vmatmul.mubr.bf16.gmra.mrb[72].mxu1 %v3395_v50 }
 0x117   :  { %1588 = vmatprep.mubr.bf16.mxu1 %v3445_v15 }
 0x11c   :  { %1758 = vmatmul.mubr.bf16.gmra.mrb[76].mxu0 %v3430_v37 }
 0x11d   :  { %1796 = vmatprep.mubr.bf16.mxu0 %v3005_v12  ;;  %v2637_v12 = vld [vmem:[#allocation10 + $0x210] sm:$0xff]  }
 0x11e   :  { %1589 = vmatmul.mubr.bf16.gmra.mrb[76].mxu1 %v3190_v59 }
 0x11f   :  { %2000 = vmatprep.mubr.bf16.mxu1 %v3242_v63 }
 0x124   :  { %1797 = vmatmul.mubr.bf16.vlgmr.msra.gmra.mrb[0].mxu0 %v2988_v61  ;;  %v2638_v61 = vld [vmem:[#allocation10 + $0x218] sm:$0xff]  }
 0x125   :  { %1934 = vmatpush1.bf16.msra.mxu0 %v2644_v30  ;;  %1803 = vmatprep.mubr.bf16.mxu0 %v3047_v54 }
 0x126   :  { %2001 = vmatmul.mubr.bf16.vlgmr.msra.gmra.mrb[80].mxu1 %v3129_v27  ;;  %1935 = vmatprep.subr.bf16.mxu0 %v3190_v59  ;;  %v2646_v27 = vld [vmem:[#allocation10 + $0x190] sm:$0xff]  }
 0x127   :  { %2409 = vmatpush3.bf16.msra.mxu1 %v3287_v17  ;;  %2007 = vmatprep.mubr.bf16.mxu1 %v3274_v36  ;;  %v2639_v17 = vld [vmem:[#allocation10 + $0x220] sm:$0xff]  }
 0x128   :  { %2410 = vmatprep.subr.bf16.mxu1 %v2636_v23 }
 0x129   :  { %1936 = vmatpush1.bf16.msra.mxu0 %v2645_v26 }
 0x12a   :  { %1937 = vmatprep.subr.bf16.mxu0 %v3190_v59 }
 0x12b   :  { %2411 = vmatpush3.bf16.msra.mxu1 %v2636_v23 }
 0x12c   :  { %1804 = vmatmul.mubr.bf16.gmra.mrb[80].mxu0 %v3017_v28  ;;  %2412 = vmatprep.subr.bf16.mxu1 %v2637_v12 }
 0x12d   :  { %1810 = vmatprep.mubr.bf16.mxu0 %v3095_v53  ;;  %1938 = vmatpush1.bf16.msra.mxu0 %v2646_v27 }
 0x12e   :  { %2008 = vmatmul.mubr.bf16.gmra.mrb[84].mxu1 %v3187_v52  ;;  %1939 = vmatprep.subr.bf16.mxu0 %v3190_v59  ;;  %v2641_v52 = vld [vmem:[#allocation10 + $0x230] sm:$0xff]  }
 0x12f   :  { %2014 = vmatprep.mubr.bf16.mxu1 %v2937_v43  ;;  %2413 = vmatpush3.bf16.msra.mxu1 %v2637_v12 }
 0x130   :  { %2414 = vmatprep.subr.bf16.mxu1 %v2638_v61 }
 0x131   :  { %1940 = vmatpush1.bf16.msra.mxu0 %v2647_v34 }
 0x132   :  { %1941 = vmatprep.subr.bf16.mxu0 %v3190_v59 }
 0x133   :  { %2415 = vmatpush3.bf16.msra.mxu1 %v2638_v61 }
 0x134   :  { %1811 = vmatmul.mubr.bf16.gmra.mrb[8].mxu0 %v3064_v16  ;;  %2416 = vmatprep.subr.bf16.mxu1 %v2639_v17 }
 0x135   :  { %1817 = vmatprep.mubr.bf16.mxu0 %v3126_v25  ;;  %1942 = vmatpush1.bf16.msra.mxu0 %v2648_v6 }
 0x136   :  { %2015 = vmatmul.mubr.bf16.gmra.mrb[88].mxu1 %v3190_v59  ;;  %1943 = vmatprep.subr.bf16.mxu0 %v3190_v59 }
 0x137   :  { %2021 = vmatprep.mubr.bf16.mxu1 %v3308_v46  ;;  %2417 = vmatpush3.bf16.msra.mxu1 %v2639_v17 }
 0x138   :  { %2418 = vmatprep.subr.bf16.mxu1 %v2640_v55 }
 0x139   :  { %1944 = vmatpush1.bf16.msra.mxu0 %v3084_v29 }
 0x13a   :  { %1945 = vmatprep.subr.bf16.mxu0 %v3190_v59 }
 0x13b   :  { %2419 = vmatpush3.bf16.msra.mxu1 %v2640_v55 }
 0x13c   :  { %1818 = vmatmul.mubr.bf16.gmra.mrb[84].mxu0 %v3105_v2  ;;  %2420 = vmatprep.subr.bf16.mxu1 %v2641_v52 }
 0x13d   :  { %1824 = vmatprep.mubr.bf16.mxu0 %v3184_v24  ;;  %1946 = vmatpush1.bf16.msra.mxu0 %v3097_v56 }
 0x13e   :  { %2022 = vmatmul.mubr.bf16.gmra.mrb[92].mxu1 %v3190_v59  ;;  %1947 = vmatprep.subr.bf16.mxu0 %v3190_v59 }
 0x13f   :  { %2027 = vmatprep.mubr.bf16.mxu1 %v3324_v62  ;;  %2421 = vmatpush3.bf16.msra.mxu1 %v2641_v52 }
 0x140   :  { %2422 = vmatprep.subr.bf16.mxu1 %v2642_v3 }
 0x141   :  { %1948 = vmatpush1.bf16.msra.mxu0 %v3132_v32 }
 0x142   :  { %1949 = vmatprep.subr.bf16.mxu0 %v3190_v59 }
 0x143   :  { %2423 = vmatpush3.bf16.msra.mxu1 %v2642_v3 }
 0x144   :  { %1825 = vmatmul.mubr.bf16.gmra.mrb[16].mxu0 %v3154_v8 }
 0x145   :  { %1831 = vmatprep.mubr.bf16.mxu0 %v3227_v49  ;;  %1950 = vmatpush1.bf16.msra.mxu0 %v3149_v4 }
 0x146   :  { %2028 = vmatmul.mubr.bf16.gmra.mrb[96].mxu1 %v3293_v39  ;;  %1951 = vmatprep.subr.bf16.mxu0 %v3190_v59 }
 0x147   :  { %2033 = vmatprep.mubr.bf16.mxu1 %v3339_v11 }
 0x149   :  { %1952 = vmatpush1.bf16.msra.mxu0 %v3168_v38 }
 0x14a   :  { %1953 = vmatprep.subr.bf16.mxu0 %v3190_v59 }
 0x14c   :  { %1832 = vmatmul.mubr.bf16.gmra.mrb[88].mxu0 %v3195_v41 }
 0x14d   :  { %1838 = vmatprep.mubr.bf16.mxu0 %v3264_v18  ;;  %1954 = vmatpush1.bf16.msra.mxu0 %v3198_v0 }
 0x14e   :  { %2034 = vmatmul.mubr.bf16.gmra.mrb[100].mxu1 %v3303_v44  ;;  %1955 = vmatprep.subr.bf16.mxu0 %v3190_v59 }
 0x14f   :  { %2040 = vmatprep.mubr.bf16.mxu1 %v3354_v51 }
 0x151   :  { %1956 = vmatpush1.bf16.msra.mxu0 %v3216_v35  ;;  %v3522_v35 = vld [vmem:[%s3718_s4] ss:$0 sm:$0xff]  ;;  %s2769_s4 = smov [#allocation11]  }
 0x152   :  { %1957 = vmatprep.subr.bf16.mxu0 %v3190_v59  ;;  %s2292_s19 = sshll.u32 %s2769_s4, 4  ;;  %s2293_s19 = int_to_ptr.vmem [resolvable:$true] %s2292_s19 }
 0x153   :  { %s2730_s20 = scalar_lea.vmem %s2293_s19, 2048  ;;  %p2735_p0 = scmp.lt.s32.totalorder %s2293_s19, %s2293_s19 }
 0x154   :  { %1839 = vmatmul.mubr.bf16.gmra.mrb[24].mxu0 %v3242_v63  ;;  %p2731_p13 = scmp.ne.s32.totalorder %s2293_s19, %s2730_s20  ;;  %p2736_p1 = scmp.lt.s32.totalorder %s2730_s20, %s2730_s20 }
 0x155   :  { %1845 = vmatprep.mubr.bf16.mxu0 %v3291_v31  ;;  %1958 = vmatpush1.bf16.msra.mxu0 %v3236_v57 }
 0x156   :  { %2041 = vmatmul.mubr.bf16.gmra.mrb[104].mxu1 %v3320_v60  ;;  %1959 = vmatprep.subr.bf16.mxu0 %v3190_v59  ;;  %p2737_p2 = por %p2736_p1, %p2735_p0 }
 0x157   :  { %2047 = vmatprep.mubr.bf16.mxu1 %v3369_v1  ;;  %v3509_v29 = vpop.f32.mrb[0].mxu1 }
 0x158   :  { %v1462_v56 = vpop.f32.mrb[1].mxu1  ;;  %p2738_p3 = pnand %p2737_p2, %p2731_p13 }
 0x159   :  { %1960 = vmatpush1.bf16.msra.mxu0 %v3256_v10  ;;  %v1463_v32 = vpop.f32.mrb[2].mxu1 }
 0x15a   :  { %1961 = vmatprep.subr.bf16.mxu0 %v3190_v59  ;;  %v1464_v4 = vpop.f32.mrb[3].mxu1  ;;  %v3745_v32 = vld [vmem:[#allocation17_spill] sm:$0xff] }
 0x15c   :  { %1846 = vmatmul.mubr.bf16.gmra.mrb[92].mxu0 %v3274_v36 }
 0x15d   :  { %1852 = vmatprep.mubr.bf16.mxu0 %v2937_v43  ;;  %1962 = vmatpush1.bf16.msra.mxu0 %v3269_v22 }
 0x15e   :  { %2048 = vmatmul.mubr.bf16.gmra.mrb[108].mxu1 %v3335_v9  ;;  %1963 = vmatprep.subr.bf16.mxu0 %v3190_v59 }
 0x15f   :  { %v1636_v38 = vpop.f32.mrb[4].mxu0  ;;  %2054 = vmatprep.mubr.bf16.mxu1 %v3384_v14  ;;  %v1467_v57 = vpop.f32.mrb[4].mxu1 }
 0x160   :  { %v1638_v0 = vpop.f32.mrb[5].mxu0  ;;  %v1468_v10 = vadd.f32 %v3522_v35, %v1467_v57  ;;  %v1469_v22 = vpop.f32.mrb[5].mxu1 }
 0x161   :  { %v1639_v63 = vpop.f32.mrb[6].mxu0  ;;  %1964 = vmatpush1.bf16.msra.mxu0 %v3284_v47  ;;  %v1470_v39 = vpop.f32.mrb[6].mxu1 }
 0x162   :  { %v1640_v36 = vpop.f32.mrb[7].mxu0  ;;  %v3526_v44 = vadd.f32 %v1636_v38, %v1468_v10  ;;  %v1471_v60 = vpop.f32.mrb[7].mxu1 }
 0x164   :  { %1853 = vmatmul.mubr.bf16.gmra.mrb[96].mxu0 %v2937_v43 }
 0x165   :  { %1858 = vmatprep.mubr.bf16.mxu0 %v3318_v58 }
 0x166   :  { %2055 = vmatmul.mubr.bf16.gmra.mrb[112].mxu1 %v3350_v21 }
 0x167   :  { %2061 = vmatprep.mubr.bf16.mxu1 %v3399_v40 }
 0x169   :  { %v3532_v9 = vpop.f32.mrb[8].mxu1 }
 0x16a   :  { %v1476_v20 = vpop.f32.mrb[9].mxu1 }
 0x16b   :  { %v1477_v47 = vpop.f32.mrb[10].mxu1 }
 0x16c   :  { %v1478_v48 = vpop.f32.mrb[11].mxu1  ;;  %1859 = vmatmul.mubr.bf16.gmra.mrb[100].mxu0 %v3308_v46  ;;  %v3744_v46 = vld [vmem:[#allocation16_spill] sm:$0xff] }
 0x16d   :  { %1864 = vmatprep.mubr.bf16.mxu0 %v3333_v7  ;;  %v3747_v47 = vld [vmem:[#allocation20_spill] sm:$0xff] }
 0x16e   :  { %2062 = vmatmul.mubr.bf16.gmra.mrb[116].mxu1 %v3743_v13 }
 0x16f   :  { %v1650_v23 = vpop.f32.mrb[12].mxu0  ;;  %2068 = vmatprep.mubr.bf16.mxu1 %v3412_v19 }
 0x170   :  { %v1652_v30 = vpop.f32.mrb[13].mxu0 }
 0x171   :  { %v1481_v12 = vpop.f32.mrb[12].mxu1  ;;  %v1653_v26 = vpop.f32.mrb[14].mxu0 }
 0x172   :  { %v1482_v21 = vadd.f32 %v3522_v35, %v1481_v12  ;;  %v1483_v61 = vpop.f32.mrb[13].mxu1  ;;  %v1654_v27 = vpop.f32.mrb[15].mxu0 }
 0x173   :  { %v1484_v17 = vpop.f32.mrb[14].mxu1 }
 0x174   :  { %v3539_v34 = vadd.f32 %v1650_v23, %v1482_v21  ;;  %v1485_v55 = vpop.f32.mrb[15].mxu1  ;;  %1865 = vmatmul.mubr.bf16.gmra.mrb[40].mxu0 %v3324_v62 }
 0x175   :  { %1871 = vmatprep.mubr.bf16.mxu0 %v3744_v46 }
 0x176   :  { %2069 = vmatmul.mubr.bf16.gmra.mrb[120].mxu1 %v3380_v45 }
 0x177   :  { %2075 = vmatprep.mubr.bf16.mxu1 %v3425_v5 }
 0x179   :  { %v3545_v6 = vpop.f32.mrb[16].mxu1 }
 0x17a   :  { %v1490_v52 = vpop.f32.mrb[17].mxu1 }
 0x17b   :  { %v1491_v3 = vpop.f32.mrb[18].mxu1 }
 0x17c   :  { %v1492_v56 = vpop.f32.mrb[19].mxu1  ;;  %1872 = vmatmul.mubr.bf16.gmra.mrb[104].mxu0 %v3339_v11  ;;  %v3746_v11 = vld [vmem:[#allocation19_spill] sm:$0xff] }
 0x17d   :  { %1878 = vmatprep.mubr.bf16.mxu0 %v3745_v32 }
 0x17e   :  { %2076 = vmatmul.mubr.bf16.gmra.mrb[124].mxu1 %v3395_v50 }
 0x17f   :  { %v1664_v4 = vpop.f32.mrb[20].mxu0  ;;  %2082 = vmatprep.mubr.bf16.mxu1 %v3445_v15 }
 0x180   :  { %v1666_v62 = vpop.f32.mrb[21].mxu0 }
 0x181   :  { %v1495_v38 = vpop.f32.mrb[20].mxu1  ;;  %v1667_v0 = vpop.f32.mrb[22].mxu0 }
 0x182   :  { %v1496_v45 = vadd.f32 %v3522_v35, %v1495_v38  ;;  %v1497_v57 = vpop.f32.mrb[21].mxu1  ;;  %v1668_v63 = vpop.f32.mrb[23].mxu0 }
 0x183   :  { %v1498_v10 = vpop.f32.mrb[22].mxu1 }
 0x184   :  { %v3552_v22 = vadd.f32 %v1664_v4, %v1496_v45  ;;  %v1499_v36 = vpop.f32.mrb[23].mxu1  ;;  %1879 = vmatmul.mubr.bf16.gmra.mrb[48].mxu0 %v3354_v51 }
 0x185   :  { %1885 = vmatprep.mubr.bf16.mxu0 %v3746_v11 }
 0x186   :  { %2083 = vmatmul.mubr.bf16.gmra.mrb[128].mxu1 %v3190_v59 }
 0x187   :  { %2089 = vmatprep.mubr.bf16.mxu1 %v3445_v15 }
 0x189   :  { %v3558_v50 = vpop.f32.mrb[24].mxu1 }
 0x18a   :  { %v1504_v39 = vpop.f32.mrb[25].mxu1 }
 0x18b   :  { %v1505_v60 = vpop.f32.mrb[26].mxu1 }
 0x18c   :  { %v1506_v20 = vpop.f32.mrb[27].mxu1  ;;  %1886 = vmatmul.mubr.bf16.gmra.mrb[108].mxu0 %v3369_v1  ;;  %v3748_v1 = vld [vmem:[#allocation21_spill] sm:$0xff] }
 0x18d   :  { %1892 = vmatprep.mubr.bf16.mxu0 %v3747_v47 }
 0x18e   :  { %2090 = vmatmul.mubr.bf16.gmra.mrb[132].mxu1 %v3190_v59 }
 0x18f   :  { %v1678_v48 = vpop.f32.mrb[28].mxu0  ;;  %2095 = vmatprep.mubr.bf16.mxu1 %v3445_v15 }
 0x190   :  { %v1680_v51 = vpop.f32.mrb[29].mxu0 }
 0x191   :  { %v1509_v13 = vpop.f32.mrb[28].mxu1  ;;  %v1681_v23 = vpop.f32.mrb[30].mxu0 }
 0x192   :  { %v1510_v30 = vadd.f32 %v3522_v35, %v1509_v13  ;;  %v1511_v12 = vpop.f32.mrb[29].mxu1  ;;  %v1682_v26 = vpop.f32.mrb[31].mxu0 }
 0x193   :  { %v1512_v21 = vpop.f32.mrb[30].mxu1 }
 0x194   :  { %v3565_v61 = vadd.f32 %v1678_v48, %v1510_v30  ;;  %v1513_v27 = vpop.f32.mrb[31].mxu1  ;;  %1893 = vmatmul.mubr.bf16.gmra.mrb[56].mxu0 %v3384_v14 }
 0x195   :  { %1899 = vmatprep.mubr.bf16.mxu0 %v3748_v1 }
 0x196   :  { %2096 = vmatmul.mubr.bf16.gmra.mrb[136].mxu1 %v3190_v59 }
 0x197   :  { %v1685_v17 = vpop.f32.mrb[32].mxu0  ;;  %2424 = vmatprep.mubr.bf16.mxu1 %v3047_v54 }
 0x198   :  { %v1686_v55 = vpop.f32.mrb[33].mxu0 }
 0x199   :  { %v1516_v52 = vpop.f32.mrb[32].mxu1  ;;  %v1687_v3 = vpop.f32.mrb[34].mxu0 }
 0x19a   :  { %v1517_v56 = vpop.f32.mrb[33].mxu1  ;;  %v1688_v4 = vpop.f32.mrb[35].mxu0 }
 0x19b   :  { %v1518_v62 = vpop.f32.mrb[34].mxu1  ;;  %v2649_v56 = vld [vmem:[#allocation2 + $0x10] sm:$0xff]  ;;  %v2650_v4 = vld [vmem:[#allocation2 + $0x18] sm:$0xff] }
 0x19c   :  { %v1519_v38 = vpop.f32.mrb[35].mxu1  ;;  %1900 = vmatmul.mubr.bf16.gmra.mrb[112].mxu0 %v3399_v40 }
 0x19d   :  { %1906 = vmatprep.mubr.bf16.mxu0 %v3421_v33 }
 0x19e   :  { %2425 = vmatmul.mubr.bf16.vlgmr.msra.gmra.mrb[140].mxu1 %v3095_v53 }
 0x19f   :  { %v1691_v14 = vpop.f32.mrb[36].mxu0  ;;  %2428 = vmatprep.mubr.bf16.mxu1 %v3126_v25 }
 0x1a0   :  { %v1692_v59 = vpop.f32.mrb[37].mxu0 }
 0x1a1   :  { %v1522_v0 = vpop.f32.mrb[36].mxu1  ;;  %v1693_v45 = vpop.f32.mrb[38].mxu0 }
 0x1a2   :  { %v1523_v54 = vpop.f32.mrb[37].mxu1  ;;  %v1694_v57 = vpop.f32.mrb[39].mxu0 }
 0x1a3   :  { %v1524_v63 = vpop.f32.mrb[38].mxu1  ;;  %v2651_v57 = vld [vmem:[#allocation2 + $0x20] sm:$0xff] }
 0x1a4   :  { %v1525_v10 = vpop.f32.mrb[39].mxu1  ;;  %1907 = vmatmul.mubr.bf16.gmra.mrb[64].mxu0 %v3412_v19 }
 0x1a5   :  { %1913 = vmatprep.mubr.bf16.mxu0 %v3441_v42  ;;  %v2652_v10 = vld [vmem:[#allocation2 + $0x28] sm:$0xff] }
 0x1a6   :  { %2429 = vmatmul.mubr.bf16.gmra.mrb[144].mxu1 %v3184_v24 }
 0x1a7   :  { %2432 = vmatprep.mubr.bf16.mxu1 %v3227_v49 }
 0x1a9   :  { %v3579_v40 = vpop.f32.mrb[40].mxu1 }
 0x1aa   :  { %v1530_v53 = vpop.f32.mrb[41].mxu1 }
 0x1ab   :  { %v1531_v36 = vpop.f32.mrb[42].mxu1 }
 0x1ac   :  { %v1532_v25 = vpop.f32.mrb[43].mxu1  ;;  %1914 = vmatmul.mubr.bf16.gmra.mrb[116].mxu0 %v3425_v5 }
 0x1ad   :  { %1920 = vmatprep.mubr.bf16.mxu0 %v3430_v37 }
 0x1ae   :  { %2433 = vmatmul.mubr.bf16.gmra.mrb[148].mxu1 %v3264_v18 }
 0x1af   :  { %v1704_v39 = vpop.f32.mrb[44].mxu0  ;;  %2436 = vmatprep.mubr.bf16.mxu1 %v3291_v31 }
 0x1b0   :  { %v1706_v19 = vpop.f32.mrb[45].mxu0 }
 0x1b1   :  { %v1535_v60 = vpop.f32.mrb[44].mxu1  ;;  %v1707_v20 = vpop.f32.mrb[46].mxu0 }
 0x1b2   :  { %v1536_v24 = vadd.f32 %v3522_v35, %v1535_v60  ;;  %v1537_v49 = vpop.f32.mrb[45].mxu1  ;;  %v1708_v48 = vpop.f32.mrb[47].mxu0 }
 0x1b3   :  { %v1538_v51 = vpop.f32.mrb[46].mxu1 }
 0x1b4   :  { %v3586_v13 = vadd.f32 %v1704_v39, %v1536_v24  ;;  %v1539_v23 = vpop.f32.mrb[47].mxu1  ;;  %1921 = vmatmul.mubr.bf16.gmra.mrb[120].mxu0 %v3445_v15  ;;  %v2653_v24 = vld [vmem:[#allocation2 + $0x30] sm:$0xff] }
 0x1b5   :  { %1926 = vmatprep.mubr.bf16.mxu0 %v3430_v37 }
 0x1b6   :  { %2437 = vmatmul.mubr.bf16.gmra.mrb[152].mxu1 %v2937_v43 }
 0x1b7   :  { %2440 = vmatprep.mubr.bf16.mxu1 %v3318_v58 }
 0x1b9   :  { %v3592_v18 = vpop.f32.mrb[48].mxu1 }
 0x1ba   :  { %v1544_v31 = vpop.f32.mrb[49].mxu1 }
 0x1bb   :  { %v1545_v5 = vpop.f32.mrb[50].mxu1 }
 0x1bc   :  { %v1546_v30 = vpop.f32.mrb[51].mxu1  ;;  %1927 = vmatmul.mubr.bf16.gmra.mrb[124].mxu0 %v3445_v15 }
 0x1bd   :  { %1965 = vmatprep.mubr.bf16.mxu0 %v3017_v28 }
 0x1be   :  { %2441 = vmatmul.mubr.bf16.gmra.mrb[156].mxu1 %v3333_v7 }
 0x1bf   :  { %v1718_v12 = vpop.f32.mrb[52].mxu0  ;;  %2444 = vmatprep.mubr.bf16.mxu1 %v3744_v46 }
 0x1c0   :  { %v1720_v26 = vpop.f32.mrb[53].mxu0 }
 0x1c1   :  { %v1549_v21 = vpop.f32.mrb[52].mxu1  ;;  %v1721_v27 = vpop.f32.mrb[54].mxu0 }
 0x1c2   :  { %v1550_v43 = vadd.f32 %v3522_v35, %v1549_v21  ;;  %v1551_v58 = vpop.f32.mrb[53].mxu1  ;;  %v1722_v17 = vpop.f32.mrb[55].mxu0 }
 0x1c3   :  { %v1552_v55 = vpop.f32.mrb[54].mxu1 }
 0x1c4   :  { %v3599_v52 = vadd.f32 %v1718_v12, %v1550_v43  ;;  %v1553_v3 = vpop.f32.mrb[55].mxu1  ;;  %1966 = vmatmul.mubr.bf16.vlgmr.msra.gmra.mrb[0].mxu0 %v2649_v56 }
 0x1c5   :  { %1972 = vmatprep.mubr.bf16.mxu0 %v3064_v16 }
 0x1c6   :  { %2445 = vmatmul.mubr.bf16.gmra.mrb[160].mxu1 %v3745_v32 }
 0x1c7   :  { %2448 = vmatprep.mubr.bf16.mxu1 %v3746_v11 }
 0x1c9   :  { %v3604_v28 = vpop.f32.mrb[56].mxu1 }
 0x1ca   :  { %v1558_v7 = vpop.f32.mrb[57].mxu1 }
 0x1cb   :  { %v1559_v15 = vpop.f32.mrb[58].mxu1 }
 0x1cc   :  { %v1560_v46 = vpop.f32.mrb[59].mxu1  ;;  %1973 = vmatmul.mubr.bf16.gmra.mrb[128].mxu0 %v2650_v4 }
 0x1cd   :  { %1979 = vmatprep.mubr.bf16.mxu0 %v3105_v2 }
 0x1ce   :  { %2449 = vmatmul.mubr.bf16.gmra.mrb[164].mxu1 %v3747_v47 }
 0x1cf   :  { %v1732_v62 = vpop.f32.mrb[60].mxu0  ;;  %2452 = vmatprep.mubr.bf16.mxu1 %v3748_v1 }
 0x1d0   :  { %v1734_v38 = vpop.f32.mrb[61].mxu0 }
 0x1d1   :  { %v1563_v16 = vpop.f32.mrb[60].mxu1  ;;  %v1735_v14 = vpop.f32.mrb[62].mxu0 }
 0x1d2   :  { %v1564_v32 = vadd.f32 %v3522_v35, %v1563_v16  ;;  %v1565_v11 = vpop.f32.mrb[61].mxu1  ;;  %v1736_v59 = vpop.f32.mrb[63].mxu0 }
 0x1d3   :  { %v1566_v0 = vpop.f32.mrb[62].mxu1 }
 0x1d4   :  { %v3610_v45 = vadd.f32 %v1732_v62, %v1564_v32  ;;  %v1567_v54 = vpop.f32.mrb[63].mxu1  ;;  %1980 = vmatmul.mubr.bf16.gmra.mrb[8].mxu0 %v2651_v57 }
 0x1d5   :  { %1986 = vmatprep.mubr.bf16.mxu0 %v3154_v8 }
 0x1d6   :  { %2453 = vmatmul.mubr.bf16.gmra.mrb[168].mxu1 %v3421_v33 }
 0x1d7   :  { %2456 = vmatprep.mubr.bf16.mxu1 %v3441_v42 }
 0x1d9   :  { %v3615_v2 = vpop.f32.mrb[64].mxu1 }
 0x1da   :  { %v1572_v47 = vpop.f32.mrb[65].mxu1 }
 0x1db   :  { %v1573_v1 = vpop.f32.mrb[66].mxu1 }
 0x1dc   :  { %v1574_v63 = vpop.f32.mrb[67].mxu1  ;;  %1987 = vmatmul.mubr.bf16.gmra.mrb[132].mxu0 %v2652_v10 }
 0x1dd   :  { %1993 = vmatprep.mubr.bf16.mxu0 %v3195_v41 }
 0x1de   :  { %2457 = vmatmul.mubr.bf16.gmra.mrb[172].mxu1 %v3430_v37 }
 0x1df   :  { %v1746_v53 = vpop.f32.mrb[68].mxu0  ;;  %2460 = vmatprep.mubr.bf16.mxu1 %v3430_v37 }
 0x1e0   :  { %v1748_v36 = vpop.f32.mrb[69].mxu0 }
 0x1e1   :  { %v1577_v8 = vpop.f32.mrb[68].mxu1  ;;  %v1749_v25 = vpop.f32.mrb[70].mxu0 }
 0x1e2   :  { %v1578_v33 = vadd.f32 %v3522_v35, %v1577_v8  ;;  %v1579_v42 = vpop.f32.mrb[69].mxu1  ;;  %v1750_v39 = vpop.f32.mrb[71].mxu0 }
 0x1e3   :  { %v1580_v19 = vpop.f32.mrb[70].mxu1 }
 0x1e4   :  { %v3621_v60 = vadd.f32 %v1746_v53, %v1578_v33  ;;  %v1581_v20 = vpop.f32.mrb[71].mxu1  ;;  %1994 = vmatmul.mubr.bf16.gmra.mrb[16].mxu0 %v2653_v24 }
 0x1e6   :  { %2461 = vmatmul.mubr.bf16.gmra.mrb[176].mxu1 %v3430_v37 }
 0x1e7   :  { %v1753_v41 = vpop.f32.mrb[72].mxu0 }
 0x1e8   :  { %v1754_v49 = vpop.f32.mrb[73].mxu0 }
 0x1e9   :  { %v1584_v48 = vpop.f32.mrb[72].mxu1  ;;  %v1755_v51 = vpop.f32.mrb[74].mxu0 }
 0x1ea   :  { %v1585_v23 = vpop.f32.mrb[73].mxu1  ;;  %v1756_v31 = vpop.f32.mrb[75].mxu0 }
 0x1eb   :  { %v1586_v5 = vpop.f32.mrb[74].mxu1 }
 0x1ec   :  { %v1587_v30 = vpop.f32.mrb[75].mxu1 }
 0x1ed   :  { %v1503_v30 = vadd.f32 %v3522_v35, %v3558_v50 }
 0x1ef   :  { %v1759_v12 = vpop.f32.mrb[76].mxu0 }
 0x1f0   :  { %v1760_v26 = vpop.f32.mrb[77].mxu0 }
 0x1f1   :  { %v1590_v21 = vpop.f32.mrb[76].mxu1  ;;  %v1761_v27 = vpop.f32.mrb[78].mxu0 }
 0x1f2   :  { %v1591_v43 = vpop.f32.mrb[77].mxu1  ;;  %v1762_v58 = vpop.f32.mrb[79].mxu0 }
 0x1f3   :  { %v1592_v17 = vpop.f32.mrb[78].mxu1 }
 0x1f4   :  { %v1593_v55 = vpop.f32.mrb[79].mxu1 }
 0x1f9   :  { %v2002_v3 = vpop.f32.mrb[80].mxu1 }
 0x1fa   :  { %v2004_v56 = vpop.f32.mrb[81].mxu1 }
 0x1fb   :  { %v2005_v7 = vpop.f32.mrb[82].mxu1 }
 0x1fc   :  { %v2006_v37 = vpop.f32.mrb[83].mxu1 }
 0x1ff   :  { %v1805_v15 = vpop.f32.mrb[80].mxu0 }
 0x200   :  { %v3625_v46 = vadd.f32 %v1805_v15, %v3526_v44  ;;  %v1807_v4 = vpop.f32.mrb[81].mxu0 }
 0x201   :  { %v2009_v62 = vpop.f32.mrb[84].mxu1  ;;  %v1808_v38 = vpop.f32.mrb[82].mxu0 }
 0x202   :  { %v2011_v16 = vpop.f32.mrb[85].mxu1  ;;  %v1809_v14 = vpop.f32.mrb[83].mxu0 }
 0x203   :  { %v2012_v32 = vpop.f32.mrb[86].mxu1 }
 0x204   :  { %v2013_v11 = vpop.f32.mrb[87].mxu1 }
 0x209   :  { %v2016_v59 = vpop.f32.mrb[88].mxu1 }
 0x20a   :  { %v2018_v0 = vpop.f32.mrb[89].mxu1 }
 0x20b   :  { %v2019_v54 = vpop.f32.mrb[90].mxu1 }
 0x20c   :  { %v2020_v57 = vpop.f32.mrb[91].mxu1 }
 0x20f   :  { %v1819_v47 = vpop.f32.mrb[84].mxu0 }
 0x210   :  { %v3628_v1 = vadd.f32 %v1819_v47, %v3539_v34  ;;  %v1821_v63 = vpop.f32.mrb[85].mxu0 }
 0x211   :  { %v2023_v10 = vpop.f32.mrb[92].mxu1  ;;  %v1822_v53 = vpop.f32.mrb[86].mxu0 }
 0x212   :  { %v2024_v44 = vpop.f32.mrb[93].mxu1  ;;  %v1823_v36 = vpop.f32.mrb[87].mxu0 }
 0x213   :  { %v2025_v8 = vpop.f32.mrb[94].mxu1 }
 0x214   :  { %v2026_v25 = vpop.f32.mrb[95].mxu1 }
 0x219   :  { %v2029_v33 = vpop.f32.mrb[96].mxu1 }
 0x21a   :  { %v2030_v42 = vpop.f32.mrb[97].mxu1 }
 0x21b   :  { %v2031_v39 = vpop.f32.mrb[98].mxu1 }
 0x21c   :  { %v2032_v19 = vpop.f32.mrb[99].mxu1 }
 0x21f   :  { %v1833_v20 = vpop.f32.mrb[88].mxu0 }
 0x220   :  { %v1834_v24 = vadd.f32 %v1833_v20, %v3552_v22  ;;  %v1835_v41 = vpop.f32.mrb[89].mxu0 }
 0x221   :  { %v2035_v49 = vpop.f32.mrb[100].mxu1  ;;  %v1836_v48 = vpop.f32.mrb[90].mxu0 }
 0x222   :  { %v2037_v51 = vpop.f32.mrb[101].mxu1  ;;  %v1837_v34 = vpop.f32.mrb[91].mxu0  ;;  %v3631_v23 = vadd.f32 %v2002_v3, %v1834_v24 }
 0x223   :  { %v2038_v31 = vpop.f32.mrb[102].mxu1 }
 0x224   :  { %v2039_v5 = vpop.f32.mrb[103].mxu1 }
 0x227   :  { %v1840_v12 = vpop.f32.mrb[24].mxu0 }
 0x228   :  { %v2503_v26 = vadd.f32 %v1840_v12, %v1503_v30  ;;  %v1842_v21 = vpop.f32.mrb[25].mxu0 }
 0x229   :  { %v2042_v27 = vpop.f32.mrb[104].mxu1  ;;  %v1843_v43 = vpop.f32.mrb[26].mxu0 }
 0x22a   :  { %v2044_v58 = vpop.f32.mrb[105].mxu1  ;;  %v1844_v17 = vpop.f32.mrb[27].mxu0  ;;  %v3635_v22 = vadd.f32 %v2503_v26, %v2009_v62 }
 0x22b   :  { %v2045_v55 = vpop.f32.mrb[106].mxu1 }
 0x22c   :  { %v2046_v56 = vpop.f32.mrb[107].mxu1 }
 0x22f   :  { %v1847_v7 = vpop.f32.mrb[92].mxu0 }
 0x230   :  { %v1848_v3 = vadd.f32 %v1847_v7, %v3565_v61  ;;  %v1849_v37 = vpop.f32.mrb[93].mxu0  ;;  %v1543_v7 = vadd.f32 %v3522_v35, %v3592_v18 }
 0x231   :  { %v2049_v15 = vpop.f32.mrb[108].mxu1  ;;  %v1850_v4 = vpop.f32.mrb[94].mxu0 }
 0x232   :  { %v2051_v38 = vpop.f32.mrb[109].mxu1  ;;  %v1851_v16 = vpop.f32.mrb[95].mxu0  ;;  %v3638_v50 = vadd.f32 %v2016_v59, %v1848_v3  ;;  %v1529_v59 = vadd.f32 %v3522_v35, %v3579_v40 }
 0x233   :  { %v2052_v14 = vpop.f32.mrb[110].mxu1 }
 0x234   :  { %v2053_v32 = vpop.f32.mrb[111].mxu1 }
 0x237   :  { %v1854_v11 = vpop.f32.mrb[96].mxu0 }
 0x238   :  { %v1855_v0 = vpop.f32.mrb[97].mxu0 }
 0x239   :  { %v2056_v54 = vpop.f32.mrb[112].mxu1  ;;  %v1856_v57 = vpop.f32.mrb[98].mxu0 }
 0x23a   :  { %v2058_v62 = vpop.f32.mrb[113].mxu1  ;;  %v1857_v47 = vpop.f32.mrb[99].mxu0 }
 0x23b   :  { %v2059_v63 = vpop.f32.mrb[114].mxu1 }
 0x23c   :  { %v2060_v10 = vpop.f32.mrb[115].mxu1 }
 0x23f   :  { %v1860_v53 = vpop.f32.mrb[100].mxu0 }
 0x240   :  { %v1861_v44 = vpop.f32.mrb[101].mxu0 }
 0x241   :  { %v2063_v61 = vpop.f32.mrb[116].mxu1  ;;  %v1862_v36 = vpop.f32.mrb[102].mxu0 }
 0x242   :  { %v2065_v8 = vpop.f32.mrb[117].mxu1  ;;  %v1863_v25 = vpop.f32.mrb[103].mxu0  ;;  %v1557_v36 = vadd.f32 %v3522_v35, %v3604_v28 }
 0x243   :  { %v2066_v33 = vpop.f32.mrb[118].mxu1 }
 0x244   :  { %v2067_v42 = vpop.f32.mrb[119].mxu1 }
 0x247   :  { %v1866_v39 = vpop.f32.mrb[40].mxu0 }
 0x248   :  { %v2506_v19 = vadd.f32 %v1866_v39, %v1529_v59  ;;  %v1868_v20 = vpop.f32.mrb[41].mxu0 }
 0x249   :  { %v2070_v24 = vpop.f32.mrb[120].mxu1  ;;  %v1869_v41 = vpop.f32.mrb[42].mxu0 }
 0x24a   :  { %v2072_v48 = vpop.f32.mrb[121].mxu1  ;;  %v1870_v51 = vpop.f32.mrb[43].mxu0  ;;  %v3642_v34 = vadd.f32 %v2506_v19, %v2035_v49 }
 0x24b   :  { %v2073_v31 = vpop.f32.mrb[122].mxu1 }
 0x24c   :  { %v2074_v5 = vpop.f32.mrb[123].mxu1 }
 0x24f   :  { %v1873_v30 = vpop.f32.mrb[104].mxu0 }
 0x250   :  { %v1874_v12 = vadd.f32 %v1873_v30, %v3586_v13  ;;  %v1875_v26 = vpop.f32.mrb[105].mxu0 }
 0x251   :  { %v2077_v21 = vpop.f32.mrb[124].mxu1  ;;  %v1876_v43 = vpop.f32.mrb[106].mxu0 }
 0x252   :  { %v2079_v58 = vpop.f32.mrb[125].mxu1  ;;  %v1877_v17 = vpop.f32.mrb[107].mxu0  ;;  %v3645_v40 = vadd.f32 %v2042_v27, %v1874_v12  ;;  %v1571_v43 = vadd.f32 %v3522_v35, %v3615_v2 }
 0x253   :  { %v2080_v55 = vpop.f32.mrb[126].mxu1 }
 0x254   :  { %v2081_v56 = vpop.f32.mrb[127].mxu1 }
 0x257   :  { %v1880_v3 = vpop.f32.mrb[48].mxu0 }
 0x258   :  { %v2509_v49 = vadd.f32 %v1880_v3, %v1543_v7  ;;  %v1882_v37 = vpop.f32.mrb[49].mxu0 }
 0x259   :  { %v2084_v4 = vpop.f32.mrb[128].mxu1  ;;  %v1883_v38 = vpop.f32.mrb[50].mxu0 }
 0x25a   :  { %v2086_v16 = vpop.f32.mrb[129].mxu1  ;;  %v1884_v14 = vpop.f32.mrb[51].mxu0  ;;  %v3649_v13 = vadd.f32 %v2509_v49, %v2049_v15 }
 0x25b   :  { %v2087_v32 = vpop.f32.mrb[130].mxu1 }
 0x25c   :  { %v2088_v11 = vpop.f32.mrb[131].mxu1 }
 0x25f   :  { %v1887_v0 = vpop.f32.mrb[108].mxu0 }
 0x260   :  { %v1888_v27 = vadd.f32 %v1887_v0, %v3599_v52  ;;  %v1889_v57 = vpop.f32.mrb[109].mxu0 }
 0x261   :  { %v2091_v62 = vpop.f32.mrb[132].mxu1  ;;  %v1890_v47 = vpop.f32.mrb[110].mxu0 }
 0x262   :  { %v2092_v63 = vpop.f32.mrb[133].mxu1  ;;  %v1891_v10 = vpop.f32.mrb[111].mxu0  ;;  %v3652_v18 = vadd.f32 %v2056_v54, %v1888_v27 }
 0x263   :  { %v2093_v53 = vpop.f32.mrb[134].mxu1 }
 0x264   :  { %v2094_v44 = vpop.f32.mrb[135].mxu1 }
 0x267   :  { %v1894_v8 = vpop.f32.mrb[56].mxu0 }
 0x268   :  { %v2512_v15 = vadd.f32 %v1894_v8, %v1557_v36  ;;  %v1896_v25 = vpop.f32.mrb[57].mxu0 }
 0x269   :  { %v2097_v33 = vpop.f32.mrb[136].mxu1  ;;  %v1897_v42 = vpop.f32.mrb[58].mxu0 }
 0x26a   :  { %v2098_v59 = vpop.f32.mrb[137].mxu1  ;;  %v1898_v39 = vpop.f32.mrb[59].mxu0  ;;  %v3656_v52 = vadd.f32 %v2512_v15, %v2063_v61 }
 0x26b   :  { %v2099_v19 = vpop.f32.mrb[138].mxu1 }
 0x26c   :  { %v2100_v20 = vpop.f32.mrb[139].mxu1 }
 0x26d   :  { %v1461_v20 = vadd.f32 %v3522_v35, %v3509_v29 }
 0x26f   :  { %v1901_v41 = vpop.f32.mrb[112].mxu0 }
 0x270   :  { %v1902_v54 = vadd.f32 %v1901_v41, %v3610_v45  ;;  %v1903_v48 = vpop.f32.mrb[113].mxu0 }
 0x271   :  { %v3659_v51 = vpop.f32.mrb[140].mxu1  ;;  %v1904_v31 = vpop.f32.mrb[114].mxu0 }
 0x272   :  { %v2136_v5 = vpop.f32.mrb[141].mxu1  ;;  %v1905_v28 = vpop.f32.mrb[115].mxu0  ;;  %v3661_v30 = vadd.f32 %v2070_v24, %v1902_v54 }
 0x273   :  { %v2427_v12 = vpop.f32.mrb[142].mxu1 }
 0x274   :  { %v2139_v26 = vpop.f32.mrb[143].mxu1 }
 0x277   :  { %v1908_v61 = vpop.f32.mrb[64].mxu0 }
 0x278   :  { %v2515_v58 = vadd.f32 %v1908_v61, %v1571_v43  ;;  %v1910_v17 = vpop.f32.mrb[65].mxu0 }
 0x279   :  { %v3665_v55 = vpop.f32.mrb[144].mxu1  ;;  %v1911_v56 = vpop.f32.mrb[66].mxu0 }
 0x27a   :  { %v3667_v45 = vpop.f32.mrb[145].mxu1  ;;  %v1912_v7 = vpop.f32.mrb[67].mxu0  ;;  %v3669_v3 = vadd.f32 %v2515_v58, %v2077_v21 }
 0x27b   :  { %v2431_v49 = vpop.f32.mrb[146].mxu1 }
 0x27c   :  { %v2153_v37 = vpop.f32.mrb[147].mxu1 }
 0x27f   :  { %v1915_v24 = vpop.f32.mrb[116].mxu0 }
 0x280   :  { %v1916_v38 = vadd.f32 %v1915_v24, %v3621_v60  ;;  %v1917_v16 = vpop.f32.mrb[117].mxu0 }
 0x281   :  { %v2434_v14 = vpop.f32.mrb[148].mxu1  ;;  %v1918_v32 = vpop.f32.mrb[118].mxu0 }
 0x282   :  { %v2172_v2 = vadd.f32 %v2434_v14, %v3631_v23  ;;  %v3673_v11 = vpop.f32.mrb[149].mxu1  ;;  %v1919_v0 = vpop.f32.mrb[119].mxu0  ;;  %v3675_v27 = vadd.f32 %v2084_v4, %v1916_v38  ;;  %v1475_v14 = vadd.f32 %v3522_v35, %v3532_v9 }
 0x283   :  { %v2435_v57 = vpop.f32.mrb[150].mxu1 }
 0x284   :  { %2276 = vst [vmem:[#allocation11 + $0x28] sm:$0xff] %v2172_v2  ;;  %v2167_v62 = vpop.f32.mrb[151].mxu1 }
 0x287   :  { %v1922_v21 = vpop.f32.mrb[120].mxu0 }
 0x288   :  { %v1923_v47 = vpop.f32.mrb[121].mxu0 }
 0x289   :  { %v2438_v63 = vpop.f32.mrb[152].mxu1  ;;  %v1924_v10 = vpop.f32.mrb[122].mxu0 }
 0x28a   :  { %v2186_v53 = vadd.f32 %v2438_v63, %v3638_v50  ;;  %v2178_v60 = vpop.f32.mrb[153].mxu1  ;;  %v1925_v44 = vpop.f32.mrb[123].mxu0 }
 0x28b   :  { %v2179_v36 = vadd.f32 %v3635_v22, %v2178_v60  ;;  %v2439_v8 = vpop.f32.mrb[154].mxu1 }
 0x28c   :  { %2278 = vst [vmem:[#allocation11 + $0x38] sm:$0xff] %v2186_v53  ;;  %v2181_v23 = vpop.f32.mrb[155].mxu1 }
 0x28d   :  { %2277 = vst [vmem:[#allocation11 + $0x30] sm:$0xff] %v2179_v36 }
 0x28f   :  { %v1928_v15 = vpop.f32.mrb[124].mxu0 }
 0x290   :  { %v1929_v4 = vpop.f32.mrb[125].mxu0 }
 0x291   :  { %v2442_v25 = vpop.f32.mrb[156].mxu1  ;;  %v1930_v33 = vpop.f32.mrb[126].mxu0  ;;  %v1489_v4 = vadd.f32 %v3522_v35, %v3545_v6 }
 0x292   :  { %v2192_v42 = vpop.f32.mrb[157].mxu1  ;;  %v1931_v59 = vpop.f32.mrb[127].mxu0 }
 0x293   :  { %v2443_v39 = vpop.f32.mrb[158].mxu1 }
 0x294   :  { %v2194_v19 = vpop.f32.mrb[159].mxu1 }
 0x297   :  { %v1967_v50 = vpop.f32.mrb[0].mxu0 }
 0x298   :  { %v2497_v41 = vadd.f32 %v1967_v50, %v1461_v20  ;;  %v1969_v54 = vpop.f32.mrb[1].mxu0 }
 0x299   :  { %v2446_v48 = vpop.f32.mrb[160].mxu1  ;;  %v1970_v22 = vpop.f32.mrb[2].mxu0 }
 0x29a   :  { %v2137_v31 = vadd.f32 %v2497_v41, %v2136_v5  ;;  %v2212_v28 = vadd.f32 %v2446_v48, %v3645_v40  ;;  %v2204_v12 = vpop.f32.mrb[161].mxu1  ;;  %v1971_v26 = vpop.f32.mrb[3].mxu0 }
 0x29b   :  { %v2205_v43 = vadd.f32 %v3642_v34, %v2204_v12  ;;  %v2447_v61 = vpop.f32.mrb[162].mxu1 }
 0x29c   :  { %2271 = vst [vmem:[#allocation11] sm:$0xff] %v2137_v31  ;;  %2280 = vst [vmem:[#allocation11 + $0x48] sm:$0xff] %v2212_v28  ;;  %v2207_v58 = vpop.f32.mrb[163].mxu1 }
 0x29d   :  { %2279 = vst [vmem:[#allocation11 + $0x40] sm:$0xff] %v2205_v43 }
 0x29f   :  { %v1974_v17 = vpop.f32.mrb[128].mxu0 }
 0x2a0   :  { %v1975_v29 = vadd.f32 %v1974_v17, %v3625_v46  ;;  %v1976_v56 = vpop.f32.mrb[129].mxu0 }
 0x2a1   :  { %v2450_v7 = vpop.f32.mrb[164].mxu1  ;;  %v1977_v49 = vpop.f32.mrb[130].mxu0 }
 0x2a2   :  { %v2144_v37 = vadd.f32 %v3659_v51, %v1975_v29  ;;  %v2226_v5 = vadd.f32 %v2450_v7, %v3652_v18  ;;  %v2218_v40 = vpop.f32.mrb[165].mxu1  ;;  %v1978_v24 = vpop.f32.mrb[131].mxu0 }
 0x2a3   :  { %v2219_v38 = vadd.f32 %v3649_v13, %v2218_v40  ;;  %v2451_v34 = vpop.f32.mrb[166].mxu1 }
 0x2a4   :  { %2272 = vst [vmem:[#allocation11 + $0x8] sm:$0xff] %v2144_v37  ;;  %2282 = vst [vmem:[#allocation11 + $0x58] sm:$0xff] %v2226_v5  ;;  %v2221_v16 = vpop.f32.mrb[167].mxu1 }
 0x2a5   :  { %2281 = vst [vmem:[#allocation11 + $0x50] sm:$0xff] %v2219_v38 }
 0x2a7   :  { %v1981_v46 = vpop.f32.mrb[8].mxu0 }
 0x2a8   :  { %v2499_v32 = vadd.f32 %v1981_v46, %v1475_v14  ;;  %v1983_v2 = vpop.f32.mrb[9].mxu0 }
 0x2a9   :  { %v2454_v0 = vpop.f32.mrb[168].mxu1  ;;  %v1984_v57 = vpop.f32.mrb[10].mxu0 }
 0x2aa   :  { %v2151_v51 = vadd.f32 %v2499_v32, %v3667_v45  ;;  %v2240_v18 = vadd.f32 %v2454_v0, %v3661_v30  ;;  %v2232_v62 = vpop.f32.mrb[169].mxu1  ;;  %v1985_v21 = vpop.f32.mrb[11].mxu0 }
 0x2ab   :  { %v2233_v13 = vadd.f32 %v3656_v52, %v2232_v62  ;;  %v2455_v47 = vpop.f32.mrb[170].mxu1 }
 0x2ac   :  { %2273 = vst [vmem:[#allocation11 + $0x10] sm:$0xff] %v2151_v51  ;;  %2284 = vst [vmem:[#allocation11 + $0x68] sm:$0xff] %v2240_v18  ;;  %v2235_v63 = vpop.f32.mrb[171].mxu1 }
 0x2ad   :  { %2283 = vst [vmem:[#allocation11 + $0x60] sm:$0xff] %v2233_v13 }
 0x2af   :  { %v1988_v10 = vpop.f32.mrb[132].mxu0 }
 0x2b0   :  { %v1989_v9 = vadd.f32 %v1988_v10, %v3628_v1  ;;  %v1990_v53 = vpop.f32.mrb[133].mxu0 }
 0x2b1   :  { %v2458_v60 = vpop.f32.mrb[172].mxu1  ;;  %v1991_v44 = vpop.f32.mrb[134].mxu0 }
 0x2b2   :  { %v2158_v36 = vadd.f32 %v3665_v55, %v1989_v9  ;;  %v2254_v45 = vadd.f32 %v2458_v60, %v3675_v27  ;;  %v2246_v30 = vpop.f32.mrb[173].mxu1  ;;  %v1992_v8 = vpop.f32.mrb[135].mxu0 }
 0x2b3   :  { %v2247_v23 = vadd.f32 %v3669_v3, %v2246_v30  ;;  %v2459_v52 = vpop.f32.mrb[174].mxu1 }
 0x2b4   :  { %2274 = vst [vmem:[#allocation11 + $0x18] sm:$0xff] %v2158_v36  ;;  %2286 = vst [vmem:[#allocation11 + $0x78] sm:$0xff] %v2254_v45  ;;  %v2249_v15 = vpop.f32.mrb[175].mxu1 }
 0x2b5   :  { %2285 = vst [vmem:[#allocation11 + $0x70] sm:$0xff] %v2247_v23 }
 0x2b7   :  { %v1995_v1 = vpop.f32.mrb[16].mxu0 }
 0x2b8   :  { %v2501_v25 = vadd.f32 %v1995_v1, %v1489_v4  ;;  %v1997_v33 = vpop.f32.mrb[17].mxu0 }
 0x2b9   :  { %v2462_v55 = vpop.f32.mrb[176].mxu1  ;;  %v1998_v42 = vpop.f32.mrb[18].mxu0 }
 0x2ba   :  { %v2165_v27 = vadd.f32 %v2501_v25, %v3673_v11  ;;  %v2260_v59 = vpop.f32.mrb[177].mxu1  ;;  %v1999_v39 = vpop.f32.mrb[19].mxu0 }
 0x2bb   :  { %v2463_v3 = vpop.f32.mrb[178].mxu1 }
 0x2bc   :  { %2275 = vst [vmem:[#allocation11 + $0x20] sm:$0xff] %v2165_v27  ;;  %v2262_v19 = vpop.f32.mrb[179].mxu1 }
 0x2bd   :  { %2741 = shalt.err (!%p2738_p3)
}
 0x2be   :  { %s2742_s24 = scalar_lea.hbm %s3719_s5, 2048 }
 0x2bf   :  { %p2743_p4 = scmp.ne.s32.totalorder %s3719_s5, %s2742_s24  ;;  %p2746_p5 = scmp.lt.u32.totalorder %s2742_s24, %s3719_s5 }
 0x2c1   :  { %p2748_p6 = pnand %p2746_p5, %p2743_p4 }
 0x2c3   :  { %2751 = shalt.err (!%p2748_p6)
}
 0x2c4   :  { %2298 = dma.vmem_to_hbm [thread:$0]  %s2293_s19, 2048, %s3719_s5, [#allocation5], %s2762_s30, %s2762_s30, %s2763_s6  }
 0x2c5   :  { %2758 = dma.done.wait [#allocation5], 2048  }
 0x2c6   :  { %2759 = vsyncadd [#allocation5], 4294965248 }
 0x2c7   :  { %2302 = vsyncpa [#allocation4], 1 }
 0x2c8   :  { %2303 = vsyncpa [#allocation9], 1 }
 0x2c9   :  { %2304 = vsyncpa [#allocation5], 1 }
 0x2ca   :  { %2305 = vsyncpa [#allocation6], 1 }

</bundles_post_ra>
